<compile_context>
chip_gen: v7x
topology: tpu7x:2x2x1
jax: 0.10.0
libtpu: 0.0.40
codegen_flags: <defaults>
</compile_context>

<pallas_src>
import functools

import jax
import jax.numpy as jnp
from jax import lax
from jax.experimental import pallas as pl
from jax.experimental.pallas import tpu as pltpu

EPS_NORM = 1e-6   # L2N eps
EPS_GEM = 1e-6    # GeM clamp eps
GEM_P = 3.0       # GeM power
LANE = 128        # TPU lane width


def _round_up(x, m):
    return (x + m - 1) // m * m


# ----------------------------------------------------------------------------
# Fused kernel: conv3x3 + ReLU + lwhiten + GeM + L2N + whiten + L2N (per image)
# ----------------------------------------------------------------------------
def _fused_kernel(x_ref, rmask_ref, wc_ref, bc_ref, wl_ref, bl_ref,
                  ww_ref, bw_ref, o_ref, *, H, W, C_IN, C_LW):
    Wp2 = W + 2
    HW2 = H * Wp2                      # H*(W+2) rows (incl. 2 garbage cols/row)

    # --- Conv 3x3 (padding=1) as 9 accumulating shift-matmuls on the MXU ----
    # x_ref is the zero-padded image flattened to ((H+3)*(W+2), C_IN).  The
    # row window starting at kh*(W+2)+kw of length H*(W+2) contains, at row
    # h*(W+2)+u with u < W, exactly x_pad[h+kh, u+kw, :].
    acc = None
    taps = [(kh, kw) for kh in range(3) for kw in range(3)]
    for t, (kh, kw) in enumerate(taps):
        s = kh * Wp2 + kw
        xs = x_ref[pl.ds(s, HW2), :]                       # (HW2, C_IN) bf16
        wk = wc_ref[pl.ds(t * C_IN, C_IN), :]              # (C_IN, F)   bf16
        part = jnp.dot(xs, wk, preferred_element_type=jnp.float32)
        acc = part if acc is None else acc + part
    feat = jnp.maximum(acc + bc_ref[...], 0.0)             # (HW2, F) f32

    # --- lwhiten: per-location Linear (bf16 MXU, f32 accumulate) ------------
    lw = jnp.dot(feat.astype(jnp.bfloat16), wl_ref[...],
                 preferred_element_type=jnp.float32) + bl_ref[...]   # (HW2, F)

    # --- GeM pool over the valid spatial positions ---------------------------
    lwc = jnp.maximum(lw, EPS_GEM)
    cube = lwc * lwc * lwc                                  # x**p without pow
    cube = cube * rmask_ref[...]                            # drop garbage cols
    pooled = jnp.sum(cube, axis=0, keepdims=True) * (1.0 / (H * W))   # (1, F)
    g = jnp.exp(jnp.log(pooled) * (1.0 / GEM_P))            # pooled ** (1/p)

    # zero the zero-padded channel lanes so they cannot pollute the L2 norm
    lane_ids = lax.broadcasted_iota(jnp.int32, g.shape, 1)
    g = jnp.where(lane_ids < C_LW, g, 0.0)

    # --- L2N -----------------------------------------------------------------
    inv = pl.reciprocal(jnp.sqrt(jnp.sum(g * g, axis=1, keepdims=True)) + EPS_NORM)
    g = g * inv

    # --- whiten Linear + L2N (tiny, f32) -------------------------------------
    y = jnp.dot(g, ww_ref[...], preferred_element_type=jnp.float32) + bw_ref[...]
    inv = pl.reciprocal(jnp.sqrt(jnp.sum(y * y, axis=1, keepdims=True)) + EPS_NORM)
    o_ref[...] = (y * inv).astype(o_ref.dtype)              # (1, D) lane-dense


def _fused_forward(xflat, row_mask, wconv, bconv, wlw, blw, wwh, bwh,
                   *, H, W, C_IN, C_LW):
    n, p2, _ = xflat.shape
    hw2 = H * (W + 2)
    f_pad = wconv.shape[1]
    lw_pad = wlw.shape[1]
    d_pad = wwh.shape[1]

    kernel = functools.partial(_fused_kernel, H=H, W=W, C_IN=C_IN, C_LW=C_LW)
    out = pl.pallas_call(
        kernel,
        out_shape=jax.ShapeDtypeStruct((n, 1, d_pad), jnp.float32),
        grid_spec=pltpu.PrefetchScalarGridSpec(
            num_scalar_prefetch=0,
            grid=(n,),
            in_specs=[
                pl.BlockSpec((None, p2, C_IN), lambda i: (i, 0, 0)),   # image i
                pl.BlockSpec((hw2, 1), lambda i: (0, 0)),              # row mask
                pl.BlockSpec((9 * C_IN, f_pad), lambda i: (0, 0)),     # conv W
                pl.BlockSpec((1, f_pad), lambda i: (0, 0)),            # conv b
                pl.BlockSpec((f_pad, lw_pad), lambda i: (0, 0)),       # lwhiten W
                pl.BlockSpec((1, lw_pad), lambda i: (0, 0)),           # lwhiten b
                pl.BlockSpec((lw_pad, d_pad), lambda i: (0, 0)),       # whiten W
                pl.BlockSpec((1, d_pad), lambda i: (0, 0)),            # whiten b
            ],
            out_specs=pl.BlockSpec((None, 1, d_pad), lambda i: (i, 0, 0)),
        ),
        compiler_params=pltpu.CompilerParams(
            dimension_semantics=("parallel",),        # megacore sharding on v7x
            vmem_limit_bytes=32 * 1024 * 1024,
        ),
    )(xflat, row_mask, wconv, bconv, wlw, blw, wwh, bwh)
    return out.reshape(n, d_pad)


# ----------------------------------------------------------------------------
# Full forward pass (ImageRetrievalNet.forward)
# ----------------------------------------------------------------------------
def image_retrieval_net_forward(x_nchw, params):
    n, c_in, h, w = x_nchw.shape
    conv_w, conv_b = params["conv_w"], params["conv_b"]   # (Cf,Cin,3,3), (Cf,)
    lw_w, lw_b = params["lw_w"], params["lw_b"]           # (Clw,Cf), (Clw,)
    wh_w, wh_b = params["wh_w"], params["wh_b"]           # (D,Clw), (D,)
    c_feat, c_lw, d_out = conv_w.shape[0], lw_w.shape[0], wh_w.shape[0]
    f_pad = _round_up(c_feat, LANE)
    lw_pad = _round_up(c_lw, LANE)
    d_pad = _round_up(d_out, LANE)

    # ---- cheap layout preprocessing (no large intermediates in HBM) --------
    # NCHW -> channels-last; zero-pad H by (1,2) (extra bottom row keeps the
    # flattened shifted windows of the (2,2) tap in bounds) and W by (1,1);
    # flatten spatial.
    xp = jnp.pad(jnp.transpose(x_nchw, (0, 2, 3, 1)),
                 ((0, 0), (1, 2), (1, 1), (0, 0)))
    xflat = xp.reshape(n, (h + 3) * (w + 2), c_in).astype(jnp.bfloat16)

    hw2 = h * (w + 2)
    row_mask = (jnp.arange(hw2) % (w + 2) < w).astype(jnp.float32)
    row_mask = row_mask.reshape(hw2, 1)

    # conv weight -> (9*C_in, F_pad) in (kh, kw, c_in) row order; lane-pad to 128
    wconv = jnp.transpose(conv_w, (2, 3, 1, 0)).reshape(9 * c_in, c_feat)
    wconv = jnp.pad(wconv, ((0, 0), (0, f_pad - c_feat))).astype(jnp.bfloat16)
    bconv = jnp.pad(conv_b, (0, f_pad - c_feat)).reshape(1, f_pad).astype(jnp.float32)
    wlw = jnp.pad(jnp.transpose(lw_w),
                  ((0, f_pad - c_feat), (0, lw_pad - c_lw))).astype(jnp.bfloat16)
    blw = jnp.pad(lw_b, (0, lw_pad - c_lw)).reshape(1, lw_pad).astype(jnp.float32)
    wwh = jnp.pad(jnp.transpose(wh_w),
                  ((0, lw_pad - c_lw), (0, d_pad - d_out))).astype(jnp.float32)
    bwh = jnp.pad(wh_b, (0, d_pad - d_out)).reshape(1, d_pad).astype(jnp.float32)

    out = _fused_forward(xflat, row_mask, wconv, bconv, wlw, blw, wwh, bwh,
                         H=h, W=w, C_IN=c_in, C_LW=c_lw)     # (N, D_pad)

    # o.permute(1, 0)
    return jnp.transpose(out[:, :d_out], (1, 0))             # (D_out, N)


# ----------------------------------------------------------------------------
# Pure-JAX (XLA) reference with the same bf16 matmul precision, for sanity.
# ----------------------------------------------------------------------------
def _reference_forward(x_nchw, params):
    n, c_in, h, w = x_nchw.shape
    x_nhwc = jnp.transpose(x_nchw, (0, 2, 3, 1))
    xp = jnp.pad(x_nhwc, ((0, 0), (1, 1), (1, 1), (0, 0)))
    patches = [xp[:, kh:kh + h, kw:kw + w, :]
               for kh in range(3) for kw in range(3)]
    p = jnp.stack(patches, axis=3).reshape(n * h * w, 9 * c_in)
    w_mat = jnp.transpose(params["conv_w"], (2, 3, 1, 0)).reshape(9 * c_in, -1)
    feat = jnp.dot(p.astype(jnp.bfloat16), w_mat.astype(jnp.bfloat16),
                   preferred_element_type=jnp.float32) + params["conv_b"]
    feat = jnp.maximum(feat, 0.0)
    lw = jnp.dot(feat.astype(jnp.bfloat16),
                 jnp.transpose(params["lw_w"]).astype(jnp.bfloat16),
                 preferred_element_type=jnp.float32) + params["lw_b"]
    lw = lw.reshape(n, h * w, -1)
    g = jnp.mean(jnp.maximum(lw, EPS_GEM) ** GEM_P, axis=1) ** (1.0 / GEM_P)
    g = g / (jnp.linalg.norm(g, axis=1, keepdims=True) + EPS_NORM)
    y = g @ jnp.transpose(params["wh_w"]) + params["wh_b"]
    y = y / (jnp.linalg.norm(y, axis=1, keepdims=True) + EPS_NORM)
    return jnp.transpose(y)


if __name__ == "__main__":
    # Small shapes: batch=2, C_in=4, H=W=16, C_feat=C_lw=D_out=32
    N, C_IN, H, W = 2, 4, 16, 16
    C_FEAT, C_LW, D_OUT = 32, 32, 32

    key = jax.random.PRNGKey(0)
    ks = jax.random.split(key, 7)
    x = jax.random.normal(ks[0], (N, C_IN, H, W), dtype=jnp.float32)
    params = {
        "conv_w": 0.1 * jax.random.normal(ks[1], (C_FEAT, C_IN, 3, 3), jnp.float32),
        "conv_b": 0.1 * jax.random.normal(ks[2], (C_FEAT,), jnp.float32),
        "lw_w": 0.1 * jax.random.normal(ks[3], (C_LW, C_FEAT), jnp.float32),
        "lw_b": 0.1 * jax.random.normal(ks[4], (C_LW,), jnp.float32),
        "wh_w": 0.1 * jax.random.normal(ks[5], (D_OUT, C_LW), jnp.float32),
        "wh_b": 0.1 * jax.random.normal(ks[6], (D_OUT,), jnp.float32),
    }

    out = jax.block_until_ready(jax.jit(image_retrieval_net_forward)(x, params))
    assert out.shape == (D_OUT, N), out.shape

    ref = jax.block_until_ready(jax.jit(_reference_forward)(x, params))
    max_err = float(jnp.max(jnp.abs(out - ref)))
    assert jnp.allclose(out, ref, rtol=5e-3, atol=5e-3), max_err

    print("KERNEL_OK")
</pallas_src>

<mosaic_0001>
module attributes {stable_mosaic.version = 11 : i64} {
  func.func @_fused_kernel(%arg0: i32, %arg1: memref<1x342x4xbf16, #tpu.memory_space<vmem>>, %arg2: memref<288x1xf32, #tpu.memory_space<vmem>>, %arg3: memref<36x128xbf16, #tpu.memory_space<vmem>>, %arg4: memref<1x128xf32, #tpu.memory_space<vmem>>, %arg5: memref<128x128xbf16, #tpu.memory_space<vmem>>, %arg6: memref<1x128xf32, #tpu.memory_space<vmem>>, %arg7: memref<128x128xf32, #tpu.memory_space<vmem>>, %arg8: memref<1x128xf32, #tpu.memory_space<vmem>>, %arg9: memref<1x1x128xf32, #tpu.memory_space<vmem>>) attributes {dimension_semantics = [#tpu.dimension_semantics<parallel>], iteration_bounds = array<i64: 2>, scalar_prefetch = 0 : i64, scratch_operands = 0 : i64, tpu.core_type = #tpu.core_type<tc>, window_params = [{transform_indices = @transform_0, window_bounds = array<i64: 1, 342, 4>}, {pipeline_mode = #tpu.pipeline_mode<synchronous>, transform_indices = @transform_1, window_bounds = array<i64: 288, 1>}, {pipeline_mode = #tpu.pipeline_mode<synchronous>, transform_indices = @transform_2, window_bounds = array<i64: 36, 128>}, {pipeline_mode = #tpu.pipeline_mode<synchronous>, transform_indices = @transform_3, window_bounds = array<i64: 1, 128>}, {pipeline_mode = #tpu.pipeline_mode<synchronous>, transform_indices = @transform_4, window_bounds = array<i64: 128, 128>}, {pipeline_mode = #tpu.pipeline_mode<synchronous>, transform_indices = @transform_5, window_bounds = array<i64: 1, 128>}, {pipeline_mode = #tpu.pipeline_mode<synchronous>, transform_indices = @transform_6, window_bounds = array<i64: 128, 128>}, {pipeline_mode = #tpu.pipeline_mode<synchronous>, transform_indices = @transform_7, window_bounds = array<i64: 1, 128>}, {transform_indices = @transform_8, window_bounds = array<i64: 1, 1, 128>}]} {
    %c0 = arith.constant 0 : index
    %c0_0 = arith.constant 0 : index
    %c0_1 = arith.constant 0 : index
    %0 = vector.load %arg1[%c0, %c0_0, %c0_1] : memref<1x342x4xbf16, #tpu.memory_space<vmem>>, vector<1x288x4xbf16>
    %1 = vector.shape_cast %0 : vector<1x288x4xbf16> to vector<288x4xbf16>
    %c0_2 = arith.constant 0 : index
    %c0_3 = arith.constant 0 : index
    %2 = vector.load %arg3[%c0_2, %c0_3] : memref<36x128xbf16, #tpu.memory_space<vmem>>, vector<4x128xbf16>
    %cst = arith.constant dense<0.000000e+00> : vector<288x128xf32>
    %3 = tpu.matmul %1, %2, %cst {dimension_numbers = #tpu.dot_dimension_numbers<[1], [0], [0], [1], [0, 0, 1, 1], [], []>} : vector<288x4xbf16>, vector<4x128xbf16>, vector<288x128xf32> -> vector<288x128xf32>
    %c0_4 = arith.constant 0 : index
    %c1 = arith.constant 1 : index
    %c0_5 = arith.constant 0 : index
    %4 = vector.load %arg1[%c0_4, %c1, %c0_5] : memref<1x342x4xbf16, #tpu.memory_space<vmem>>, vector<1x288x4xbf16>
    %5 = vector.shape_cast %4 : vector<1x288x4xbf16> to vector<288x4xbf16>
    %c4 = arith.constant 4 : index
    %c0_6 = arith.constant 0 : index
    %6 = vector.load %arg3[%c4, %c0_6] : memref<36x128xbf16, #tpu.memory_space<vmem>>, vector<4x128xbf16>
    %cst_7 = arith.constant dense<0.000000e+00> : vector<288x128xf32>
    %7 = tpu.matmul %5, %6, %cst_7 {dimension_numbers = #tpu.dot_dimension_numbers<[1], [0], [0], [1], [0, 0, 1, 1], [], []>} : vector<288x4xbf16>, vector<4x128xbf16>, vector<288x128xf32> -> vector<288x128xf32>
    %8 = arith.addf %3, %7 : vector<288x128xf32>
    %c0_8 = arith.constant 0 : index
    %c2 = arith.constant 2 : index
    %c0_9 = arith.constant 0 : index
    %9 = vector.load %arg1[%c0_8, %c2, %c0_9] : memref<1x342x4xbf16, #tpu.memory_space<vmem>>, vector<1x288x4xbf16>
    %10 = vector.shape_cast %9 : vector<1x288x4xbf16> to vector<288x4xbf16>
    %c8 = arith.constant 8 : index
    %c0_10 = arith.constant 0 : index
    %11 = vector.load %arg3[%c8, %c0_10] : memref<36x128xbf16, #tpu.memory_space<vmem>>, vector<4x128xbf16>
    %cst_11 = arith.constant dense<0.000000e+00> : vector<288x128xf32>
    %12 = tpu.matmul %10, %11, %cst_11 {dimension_numbers = #tpu.dot_dimension_numbers<[1], [0], [0], [1], [0, 0, 1, 1], [], []>} : vector<288x4xbf16>, vector<4x128xbf16>, vector<288x128xf32> -> vector<288x128xf32>
    %13 = arith.addf %8, %12 : vector<288x128xf32>
    %c0_12 = arith.constant 0 : index
    %c18 = arith.constant 18 : index
    %c0_13 = arith.constant 0 : index
    %14 = vector.load %arg1[%c0_12, %c18, %c0_13] : memref<1x342x4xbf16, #tpu.memory_space<vmem>>, vector<1x288x4xbf16>
    %15 = vector.shape_cast %14 : vector<1x288x4xbf16> to vector<288x4xbf16>
    %c12 = arith.constant 12 : index
    %c0_14 = arith.constant 0 : index
    %16 = vector.load %arg3[%c12, %c0_14] : memref<36x128xbf16, #tpu.memory_space<vmem>>, vector<4x128xbf16>
    %cst_15 = arith.constant dense<0.000000e+00> : vector<288x128xf32>
    %17 = tpu.matmul %15, %16, %cst_15 {dimension_numbers = #tpu.dot_dimension_numbers<[1], [0], [0], [1], [0, 0, 1, 1], [], []>} : vector<288x4xbf16>, vector<4x128xbf16>, vector<288x128xf32> -> vector<288x128xf32>
    %18 = arith.addf %13, %17 : vector<288x128xf32>
    %c0_16 = arith.constant 0 : index
    %c19 = arith.constant 19 : index
    %c0_17 = arith.constant 0 : index
    %19 = vector.load %arg1[%c0_16, %c19, %c0_17] : memref<1x342x4xbf16, #tpu.memory_space<vmem>>, vector<1x288x4xbf16>
    %20 = vector.shape_cast %19 : vector<1x288x4xbf16> to vector<288x4xbf16>
    %c16 = arith.constant 16 : index
    %c0_18 = arith.constant 0 : index
    %21 = vector.load %arg3[%c16, %c0_18] : memref<36x128xbf16, #tpu.memory_space<vmem>>, vector<4x128xbf16>
    %cst_19 = arith.constant dense<0.000000e+00> : vector<288x128xf32>
    %22 = tpu.matmul %20, %21, %cst_19 {dimension_numbers = #tpu.dot_dimension_numbers<[1], [0], [0], [1], [0, 0, 1, 1], [], []>} : vector<288x4xbf16>, vector<4x128xbf16>, vector<288x128xf32> -> vector<288x128xf32>
    %23 = arith.addf %18, %22 : vector<288x128xf32>
    %c0_20 = arith.constant 0 : index
    %c20 = arith.constant 20 : index
    %c0_21 = arith.constant 0 : index
    %24 = vector.load %arg1[%c0_20, %c20, %c0_21] : memref<1x342x4xbf16, #tpu.memory_space<vmem>>, vector<1x288x4xbf16>
    %25 = vector.shape_cast %24 : vector<1x288x4xbf16> to vector<288x4xbf16>
    %c20_22 = arith.constant 20 : index
    %c0_23 = arith.constant 0 : index
    %26 = vector.load %arg3[%c20_22, %c0_23] : memref<36x128xbf16, #tpu.memory_space<vmem>>, vector<4x128xbf16>
    %cst_24 = arith.constant dense<0.000000e+00> : vector<288x128xf32>
    %27 = tpu.matmul %25, %26, %cst_24 {dimension_numbers = #tpu.dot_dimension_numbers<[1], [0], [0], [1], [0, 0, 1, 1], [], []>} : vector<288x4xbf16>, vector<4x128xbf16>, vector<288x128xf32> -> vector<288x128xf32>
    %28 = arith.addf %23, %27 : vector<288x128xf32>
    %c0_25 = arith.constant 0 : index
    %c36 = arith.constant 36 : index
    %c0_26 = arith.constant 0 : index
    %29 = vector.load %arg1[%c0_25, %c36, %c0_26] : memref<1x342x4xbf16, #tpu.memory_space<vmem>>, vector<1x288x4xbf16>
    %30 = vector.shape_cast %29 : vector<1x288x4xbf16> to vector<288x4xbf16>
    %c24 = arith.constant 24 : index
    %c0_27 = arith.constant 0 : index
    %31 = vector.load %arg3[%c24, %c0_27] : memref<36x128xbf16, #tpu.memory_space<vmem>>, vector<4x128xbf16>
    %cst_28 = arith.constant dense<0.000000e+00> : vector<288x128xf32>
    %32 = tpu.matmul %30, %31, %cst_28 {dimension_numbers = #tpu.dot_dimension_numbers<[1], [0], [0], [1], [0, 0, 1, 1], [], []>} : vector<288x4xbf16>, vector<4x128xbf16>, vector<288x128xf32> -> vector<288x128xf32>
    %33 = arith.addf %28, %32 : vector<288x128xf32>
    %c0_29 = arith.constant 0 : index
    %c37 = arith.constant 37 : index
    %c0_30 = arith.constant 0 : index
    %34 = vector.load %arg1[%c0_29, %c37, %c0_30] : memref<1x342x4xbf16, #tpu.memory_space<vmem>>, vector<1x288x4xbf16>
    %35 = vector.shape_cast %34 : vector<1x288x4xbf16> to vector<288x4xbf16>
    %c28 = arith.constant 28 : index
    %c0_31 = arith.constant 0 : index
    %36 = vector.load %arg3[%c28, %c0_31] : memref<36x128xbf16, #tpu.memory_space<vmem>>, vector<4x128xbf16>
    %cst_32 = arith.constant dense<0.000000e+00> : vector<288x128xf32>
    %37 = tpu.matmul %35, %36, %cst_32 {dimension_numbers = #tpu.dot_dimension_numbers<[1], [0], [0], [1], [0, 0, 1, 1], [], []>} : vector<288x4xbf16>, vector<4x128xbf16>, vector<288x128xf32> -> vector<288x128xf32>
    %38 = arith.addf %33, %37 : vector<288x128xf32>
    %c0_33 = arith.constant 0 : index
    %c38 = arith.constant 38 : index
    %c0_34 = arith.constant 0 : index
    %39 = vector.load %arg1[%c0_33, %c38, %c0_34] : memref<1x342x4xbf16, #tpu.memory_space<vmem>>, vector<1x288x4xbf16>
    %40 = vector.shape_cast %39 : vector<1x288x4xbf16> to vector<288x4xbf16>
    %c32 = arith.constant 32 : index
    %c0_35 = arith.constant 0 : index
    %41 = vector.load %arg3[%c32, %c0_35] : memref<36x128xbf16, #tpu.memory_space<vmem>>, vector<4x128xbf16>
    %cst_36 = arith.constant dense<0.000000e+00> : vector<288x128xf32>
    %42 = tpu.matmul %40, %41, %cst_36 {dimension_numbers = #tpu.dot_dimension_numbers<[1], [0], [0], [1], [0, 0, 1, 1], [], []>} : vector<288x4xbf16>, vector<4x128xbf16>, vector<288x128xf32> -> vector<288x128xf32>
    %43 = arith.addf %38, %42 : vector<288x128xf32>
    %c0_37 = arith.constant 0 : index
    %c0_38 = arith.constant 0 : index
    %44 = vector.load %arg4[%c0_37, %c0_38] : memref<1x128xf32, #tpu.memory_space<vmem>>, vector<1x128xf32>
    %45 = vector.broadcast %44 : vector<1x128xf32> to vector<288x128xf32>
    %46 = arith.addf %43, %45 : vector<288x128xf32>
    %cst_39 = arith.constant 0.000000e+00 : f32
    %47 = vector.broadcast %cst_39 : f32 to vector<288x128xf32>
    %48 = arith.maximumf %46, %47 : vector<288x128xf32>
    %49 = arith.truncf %48 : vector<288x128xf32> to vector<288x128xbf16>
    %c0_40 = arith.constant 0 : index
    %c0_41 = arith.constant 0 : index
    %50 = vector.load %arg5[%c0_40, %c0_41] : memref<128x128xbf16, #tpu.memory_space<vmem>>, vector<128x128xbf16>
    %cst_42 = arith.constant dense<0.000000e+00> : vector<288x128xf32>
    %51 = tpu.matmul %49, %50, %cst_42 {dimension_numbers = #tpu.dot_dimension_numbers<[1], [0], [0], [1], [0, 0, 1, 1], [], []>} : vector<288x128xbf16>, vector<128x128xbf16>, vector<288x128xf32> -> vector<288x128xf32>
    %c0_43 = arith.constant 0 : index
    %c0_44 = arith.constant 0 : index
    %52 = vector.load %arg6[%c0_43, %c0_44] : memref<1x128xf32, #tpu.memory_space<vmem>>, vector<1x128xf32>
    %53 = vector.broadcast %52 : vector<1x128xf32> to vector<288x128xf32>
    %54 = arith.addf %51, %53 : vector<288x128xf32>
    %cst_45 = arith.constant 9.99999997E-7 : f32
    %55 = vector.broadcast %cst_45 : f32 to vector<288x128xf32>
    %56 = arith.maximumf %54, %55 : vector<288x128xf32>
    %57 = arith.mulf %56, %56 : vector<288x128xf32>
    %58 = arith.mulf %57, %56 : vector<288x128xf32>
    %c0_46 = arith.constant 0 : index
    %c0_47 = arith.constant 0 : index
    %59 = vector.load %arg2[%c0_46, %c0_47] : memref<288x1xf32, #tpu.memory_space<vmem>>, vector<288x1xf32>
    %60 = vector.broadcast %59 : vector<288x1xf32> to vector<288x128xf32>
    %61 = arith.mulf %58, %60 : vector<288x128xf32>
    %cst_48 = arith.constant dense<0.000000e+00> : vector<128xf32>
    %62 = vector.multi_reduction <add>, %61, %cst_48 [0] : vector<288x128xf32> to vector<128xf32>
    %63 = vector.shape_cast %62 : vector<128xf32> to vector<1x128xf32>
    %cst_49 = arith.constant 3.906250e-03 : f32
    %64 = vector.broadcast %cst_49 : f32 to vector<1x128xf32>
    %65 = arith.mulf %63, %64 : vector<1x128xf32>
    %66 = math.log %65 : vector<1x128xf32>
    %cst_50 = arith.constant 0.333333343 : f32
    %67 = vector.broadcast %cst_50 : f32 to vector<1x128xf32>
    %68 = arith.mulf %66, %67 : vector<1x128xf32>
    %69 = math.exp %68 : vector<1x128xf32>
    %70 = tpu.iota {dimensions = array<i32: 1>} : vector<1x128xi32>
    %c32_i32 = arith.constant 32 : i32
    %71 = vector.broadcast %c32_i32 : i32 to vector<1x128xi32>
    %72 = arith.cmpi slt, %70, %71 : vector<1x128xi32>
    %cst_51 = arith.constant 0.000000e+00 : f32
    %73 = vector.broadcast %cst_51 : f32 to vector<1x128xf32>
    %74 = arith.select %72, %69, %73 : vector<1x128xi1>, vector<1x128xf32>
    %75 = arith.mulf %74, %74 : vector<1x128xf32>
    %cst_52 = arith.constant dense<0.000000e+00> : vector<1xf32>
    %76 = vector.multi_reduction <add>, %75, %cst_52 [1] : vector<1x128xf32> to vector<1xf32>
    %77 = vector.shape_cast %76 : vector<1xf32> to vector<1x1xf32>
    %78 = math.sqrt %77 : vector<1x1xf32>
    %cst_53 = arith.constant 9.99999997E-7 : f32
    %79 = vector.broadcast %cst_53 : f32 to vector<1x1xf32>
    %80 = arith.addf %78, %79 : vector<1x1xf32>
    %81 = tpu.reciprocal %80 : vector<1x1xf32> -> vector<1x1xf32>
    %82 = vector.broadcast %81 : vector<1x1xf32> to vector<1x128xf32>
    %83 = arith.mulf %74, %82 : vector<1x128xf32>
    %c0_54 = arith.constant 0 : index
    %c0_55 = arith.constant 0 : index
    %84 = vector.load %arg7[%c0_54, %c0_55] : memref<128x128xf32, #tpu.memory_space<vmem>>, vector<128x128xf32>
    %cst_56 = arith.constant dense<0.000000e+00> : vector<1x128xf32>
    %85 = tpu.matmul %83, %84, %cst_56 {dimension_numbers = #tpu.dot_dimension_numbers<[1], [0], [0], [1], [0, 0, 1, 1], [], []>} : vector<1x128xf32>, vector<128x128xf32>, vector<1x128xf32> -> vector<1x128xf32>
    %c0_57 = arith.constant 0 : index
    %c0_58 = arith.constant 0 : index
    %86 = vector.load %arg8[%c0_57, %c0_58] : memref<1x128xf32, #tpu.memory_space<vmem>>, vector<1x128xf32>
    %87 = arith.addf %85, %86 : vector<1x128xf32>
    %88 = arith.mulf %87, %87 : vector<1x128xf32>
    %cst_59 = arith.constant dense<0.000000e+00> : vector<1xf32>
    %89 = vector.multi_reduction <add>, %88, %cst_59 [1] : vector<1x128xf32> to vector<1xf32>
    %90 = vector.shape_cast %89 : vector<1xf32> to vector<1x1xf32>
    %91 = math.sqrt %90 : vector<1x1xf32>
    %cst_60 = arith.constant 9.99999997E-7 : f32
    %92 = vector.broadcast %cst_60 : f32 to vector<1x1xf32>
    %93 = arith.addf %91, %92 : vector<1x1xf32>
    %94 = tpu.reciprocal %93 : vector<1x1xf32> -> vector<1x1xf32>
    %95 = vector.broadcast %94 : vector<1x1xf32> to vector<1x128xf32>
    %96 = arith.mulf %87, %95 : vector<1x128xf32>
    %c0_61 = arith.constant 0 : index
    %c0_62 = arith.constant 0 : index
    %c0_63 = arith.constant 0 : index
    %97 = vector.load %arg9[%c0_61, %c0_62, %c0_63] : memref<1x1x128xf32, #tpu.memory_space<vmem>>, vector<1x1x128xf32>
    %98 = vector.shape_cast %97 : vector<1x1x128xf32> to vector<1x128xf32>
    %99 = vector.shape_cast %96 : vector<1x128xf32> to vector<1x1x128xf32>
    tpu.vector_store %arg9[%c0_61, %c0_62, %c0_63], %99 {strides = array<i32>} : memref<1x1x128xf32, #tpu.memory_space<vmem>>, vector<1x1x128xf32>,
    return
  }
  func.func @transform_0(%arg0: i32) -> (i32, i32, i32) {
    %c0_i32 = arith.constant 0 : i32
    %c0_i32_0 = arith.constant 0 : i32
    %c0_i32_1 = arith.constant 0 : i32
    return %arg0, %c0_i32, %c0_i32_0 : i32, i32, i32
  }
  func.func @transform_1(%arg0: i32) -> (i32, i32) {
    %c0_i32 = arith.constant 0 : i32
    %c0_i32_0 = arith.constant 0 : i32
    %c0_i32_1 = arith.constant 0 : i32
    return %c0_i32, %c0_i32_0 : i32, i32
  }
  func.func @transform_2(%arg0: i32) -> (i32, i32) {
    %c0_i32 = arith.constant 0 : i32
    %c0_i32_0 = arith.constant 0 : i32
    %c0_i32_1 = arith.constant 0 : i32
    return %c0_i32, %c0_i32_0 : i32, i32
  }
  func.func @transform_3(%arg0: i32) -> (i32, i32) {
    %c0_i32 = arith.constant 0 : i32
    %c0_i32_0 = arith.constant 0 : i32
    %c0_i32_1 = arith.constant 0 : i32
    return %c0_i32, %c0_i32_0 : i32, i32
  }
  func.func @transform_4(%arg0: i32) -> (i32, i32) {
    %c0_i32 = arith.constant 0 : i32
    %c0_i32_0 = arith.constant 0 : i32
    %c0_i32_1 = arith.constant 0 : i32
    return %c0_i32, %c0_i32_0 : i32, i32
  }
  func.func @transform_5(%arg0: i32) -> (i32, i32) {
    %c0_i32 = arith.constant 0 : i32
    %c0_i32_0 = arith.constant 0 : i32
    %c0_i32_1 = arith.constant 0 : i32
    return %c0_i32, %c0_i32_0 : i32, i32
  }
  func.func @transform_6(%arg0: i32) -> (i32, i32) {
    %c0_i32 = arith.constant 0 : i32
    %c0_i32_0 = arith.constant 0 : i32
    %c0_i32_1 = arith.constant 0 : i32
    return %c0_i32, %c0_i32_0 : i32, i32
  }
  func.func @transform_7(%arg0: i32) -> (i32, i32) {
    %c0_i32 = arith.constant 0 : i32
    %c0_i32_0 = arith.constant 0 : i32
    %c0_i32_1 = arith.constant 0 : i32
    return %c0_i32, %c0_i32_0 : i32, i32
  }
  func.func @transform_8(%arg0: i32) -> (i32, i32, i32) {
    %c0_i32 = arith.constant 0 : i32
    %c0_i32_0 = arith.constant 0 : i32
    %c0_i32_1 = arith.constant 0 : i32
    return %arg0, %c0_i32, %c0_i32_0 : i32, i32, i32
  }
}

</mosaic_0001>

<bundles_post_ra>
// kernel: image_retrieval_net_forward.1
= control target key start
LH: loop header
LB: loop body
LE: loop exit
PB: predicated region body
PF: predicated region fallthrough
CT: control target
= control target key end

     0   :  { %s6061_s27 = smov 0   ;;  %s7313_s0 = inlined_call_operand.vmem [shape: bf16[2,342,4], index: 0, kind: input, shape index: {}]   ;;  %s7314_s1 = inlined_call_operand.vmem [shape: f32[288,1], index: 1, kind: input, shape index: {}]   ;;  %s7315_s2 = inlined_call_operand.vmem [shape: bf16[36,128], index: 2, kind: input, shape index: {}]   ;;  %s7316_s3 = inlined_call_operand.vmem [shape: f32[1,128], index: 3, kind: input, shape index: {}]   ;;  %s7317_s4 = inlined_call_operand.vmem [shape: bf16[128,128], index: 4, kind: input, shape index: {}]   ;;  %s7318_s5 = inlined_call_operand.vmem [shape: f32[1,128], index: 5, kind: input, shape index: {}]   ;;  %s7319_s6 = inlined_call_operand.vmem [shape: f32[128,128], index: 6, kind: input, shape index: {}]   ;;  %s7320_s7 = inlined_call_operand.vmem [shape: f32[1,128], index: 7, kind: input, shape index: {}]   ;;  %s7321_s8 = inlined_call_operand.vmem [shape: f32[2,1,128], index: 8, kind: output, shape index: {}]  }
   0x1 LB: > { %s4678_s28 = sadd.s32 4294967295, %s6010_s27   ;;  %p4682_p0 = scmp.ge.s32.totalorder %s6010_s27, 1  ;;  %s6010_s27 = sphi %s6061_s27, %s18_s27  }
   0x2   : > { %p262_p1 = scmp.lt.s32.totalorder %s6010_s27, 3 }
   0x4   : > { %p263_p2 = pnand %p4682_p0, %p262_p1 }
   0x6   : > { %266 = sbr.rel (%p263_p2) target bundleno = 1447 (0x5a7), region = 52 }
   0xd   : > { %vm643_vm0 = vcmask 1041408   ;;  %v1796_v0 = vld [vmem:[%s7315_s2 + $0x8] sm:$0x3]  ;;  %p294_p3 = scmp.lt.s32.totalorder %s4678_s28, 1  ;;  %v339_v5 = vld [vmem:[%s7315_s2] sm:$0x3] }
   0xe   : > { %5883 = vmatprep.subr.msk.bf16.mxu0 %vm643_vm0, %v1796_v0  ;;  %v5903_v1 = vld [vmem:[%s7315_s2] ss:$0 sps:$4 sm:$0xcc]   ;;  %v2026_v2 = vsel %vm643_vm0, %v1796_v0, 0  ;;  %vm435_vm1 = vsmask.f32 7424 }
   0xf   : > { %5291 = vmatpush3.bf16.msra.mxu0 %v2026_v2  ;;  %s7337_s28 = smov (!%p294_p3, %s4678_s28), 1  ;;  %v587_v3 = vrot.slane %v5903_v1, 2  ;;  %v5908_v4 = vld [vmem:[%s7315_s2 + $0x8] ss:$0 sps:$4 sm:$0xcc]   ;;  %v861_v8 = vsel %vm643_vm0, %v339_v5, 0 }
  0x10   : > { %s5888_s15 = smul.u32 172, %s7337_s28  ;;  %v2287_v7 = vrot.slane %v5908_v4, 2  ;;  %vm588_vm2 = vcmask 31744   ;;  %vm1800_vm3 = vsmask.f32 6400  ;;  %vm2246_vm4 = vcmask 1045504   ;;  %s301_s17 = scalar_lea.vmem %s7321_s8, %s7337_s28 }
  0x11   : > { %5879 = vmatprep.subr.msk.bf16.mxu1 %vm643_vm0, %v587_v3  ;;  %v645_v6 = vsel %vm643_vm0, %v587_v3, 0  ;;  %v6173_v2 = vld [vmem:[%s7315_s2 + $0xc] sm:$0x3]  ;;  %vm1045_vm5 = vcmask 1046528   ;;  %vm3001_vm6 = vsmask.f32 5376 }
  0x12   : > { %5139 = vmatpush3.bf16.msra.mxu1 %v645_v6  ;;  %s6092_s18 = scalar_lea.vmem %s7313_s0, %s5888_s15  ;;  %5884 = vmatprep.subr.msk.bf16.mxu0 %vm643_vm0, %v2287_v7  ;;  %v6108_v14 = vsel %vm643_vm0, %v2287_v7, 0  ;;  %vm3451_vm7 = vcmask 1044480   ;;  %vm6014_vm9 = vmmov 0   ;;  %vm4616_vm12 = vcmask 1040384  }
  0x13   : > { %v303_v9 = vld [vmem:[%s6092_s18] sm:$0xf]  ;;  %v6096_v10 = vld [vmem:[%s6092_s18 + $0x4] sm:$0xf]  ;;  %5880 = vmatprep.subr.msk.bf16.mxu1 %vm643_vm0, %v339_v5  ;;  %v6104_v12 = vld [vmem:[%s6092_s18 + $0x8] sm:$0xff]  }
  0x14   : > { %7328 = vst [vmem:[#allocation2_spill] sm:$0xff] %v6096_v10  ;;  %v6101_v11 = vcombine.low %v303_v9, %v6096_v10  ;;  %v1353_v13 = vld [vmem:[%s6092_s18 + $0x8] sm:$0xe]  ;;  %v6111_v15 = vld [vmem:[%s6092_s18 + $0xc] sm:$0xf]  ;;  %v444_v18 = vshll.u32 %v6104_v12, 16 }
  0x15   : > { %v448_v19 = vshrl.u32 %v6104_v12, 16  ;;  %v6118_v20 = vld [vmem:[%s6092_s18 + $0x10] sm:$0xff]   ;;  %v6124_v22 = vcombine.low %v1353_v13, %v6111_v15  ;;  %v6132_v30 = vld [vmem:[%s6092_s18 + $0x18] sm:$0xff]   ;;  %v6138_v36 = vld [vmem:[%s6092_s18 + $0x20] sm:$0xff]  }
  0x16   : > { %v437_v16 = vshrl.u32 %v6101_v11, 16  ;;  %v439_v17 = vshll.u32 %v6101_v11, 16  ;;  %v6121_v21 = vld [vmem:[%s6092_s18 + $0x10] sm:$0xff]   ;;  %v446_v24 = vrot.slane %v444_v18, 1  ;;  %v1810_v25 = vshrl.u32 %v6118_v20, 16  ;;  %v6135_v35 = vld [vmem:[%s6092_s18 + $0x18] sm:$0xff]  }
  0x17   : > { %7329 = vst [vmem:[#allocation3_spill] sm:$0xff] %v6124_v22  ;;  %v1813_v26 = vshll.u32 %v6118_v20, 16  ;;  %v1802_v27 = vshrl.u32 %v6124_v22, 16  ;;  %v1805_v28 = vshll.u32 %v6124_v22, 16  ;;  %v452_v29 = vshll.u32 %v6121_v21, 16  ;;  %v6148_v49 = vld [vmem:[%s6092_s18 + $0x20] sm:$0xff]  }
  0x18   : > { %v441_v23 = vrot.slane %v439_v17, 1  ;;  %v450_v32 = vor.u32 %v448_v19, %v446_v24  ;;  %v1812_v33 = vrot.slane %v1810_v25, 1  ;;  %v1819_v40 = vshrl.u32 %v6132_v30, 16  ;;  %v6151_v50 = vld [vmem:[%s6092_s18 + $0x28] sm:$0xff]   ;;  %v6163_v60 = vld [vmem:[%s6092_s18 + $0x30] sm:$0xff]  }
  0x19   : > { %v1815_v34 = vrot.slane %v1813_v26, 2  ;;  %v1804_v37 = vrot.slane %v1802_v27, 1  ;;  %v1807_v38 = vrot.slane %v1805_v28, 2  ;;  %v454_v39 = vrot.slane %v452_v29, 1  ;;  %v6157_v55 = vld [vmem:[%s6092_s18 + $0x28] sm:$0xff]   ;;  %v6168_v1 = vld [vmem:[%s6092_s18 + $0x30] sm:$0xff]  }
  0x1a   : > { %v442_v31 = vor.u32 %v441_v23, %v437_v16  ;;  %v1822_v43 = vshll.u32 %v6132_v30, 16  ;;  %v456_v44 = vshrl.u32 %v6121_v21, 16  ;;  %v1821_v47 = vrot.slane %v1819_v40, 1  ;;  %v6185_v23 = vld [vmem:[%s6092_s18 + $0x38] sm:$0xff]  }
  0x1b   : > { %v1816_v42 = vor.u32 %v1815_v34, %v1812_v33  ;;  %v1808_v45 = vor.u32 %v1807_v38, %v1804_v37  ;;  %v455_v46 = vsel %vm435_vm1, %v450_v32, %v454_v39  ;;  %v460_v48 = vshll.u32 %v6135_v35, 16  ;;  %v6194_v33 = vld [vmem:[%s6092_s18 + $0x38] sm:$0xff]  }
  0x1c   : > { %v447_v41 = vsel %vm435_vm1, %v442_v31, %v446_v24  ;;  %v1824_v51 = vrot.slane %v1822_v43, 2  ;;  %v458_v52 = vor.u32 %v456_v44, %v454_v39  ;;  %v1828_v53 = vshrl.u32 %v6138_v36, 16  ;;  %v6205_v43 = vld [vmem:[%s6092_s18 + $0x40] sm:$0xff]  }
  0x1d   : > { %5140 = vmatprep.mubr.msk.bf16.mxu1 %vm588_vm2, %v447_v41  ;;  %v1831_v54 = vshll.u32 %v6138_v36, 16  ;;  %v1817_v56 = vsel %vm1800_vm3, %v1808_v45, %v1816_v42  ;;  %v462_v57 = vrot.slane %v460_v48, 1  ;;  %v464_v58 = vshrl.u32 %v6135_v35, 16  ;;  %v6210_v48 = vld [vmem:[%s6092_s18 + $0x40] sm:$0xff]  }
  0x1e   : > { %5141 = vmatmul.mubr.msk.bf16.vlgmr.msra.gmra.mrb[0].mxu1 %vm588_vm2, %v455_v46  ;;  %v468_v59 = vshll.u32 %v6148_v49, 16  ;;  %5292 = vmatprep.mubr.msk.bf16.mxu0 %vm588_vm2, %v1817_v56  ;;  %v1825_v61 = vor.u32 %v1824_v51, %v1821_v47  ;;  %v1830_v62 = vrot.slane %v1828_v53, 1  ;;  %v1837_v0 = vshrl.u32 %v6151_v50, 16 }
  0x1f   : > { %5177 = vmatpush3.bf16.msra.mxu1 %v861_v8  ;;  %v1833_v63 = vrot.slane %v1831_v54, 2  ;;  %v463_v3 = vsel %vm435_vm1, %v458_v52, %v462_v57  ;;  %v466_v4 = vor.u32 %v464_v58, %v462_v57  ;;  %v1840_v6 = vshll.u32 %v6151_v50, 16 }
  0x20   : > { %v470_v5 = vrot.slane %v468_v59, 1  ;;  %v1826_v7 = vsel %vm1800_vm3, %v1816_v42, %v1825_v61  ;;  %5144 = vmatprep.mubr.msk.bf16.mxu1 %vm588_vm2, %v463_v3  ;;  %v1839_v9 = vrot.slane %v1837_v0, 1  ;;  %v472_v13 = vshrl.u32 %v6148_v49, 16 }
  0x21   : > { %v1834_v8 = vor.u32 %v1833_v63, %v1830_v62  ;;  %5293 = vmatmul.mubr.msk.bf16.vlgmr.msra.gmra.mrb[0].mxu0 %vm588_vm2, %v1826_v7  ;;  %v1842_v17 = vrot.slane %v1840_v6, 2  ;;  %v476_v18 = vshll.u32 %v6157_v55, 16  ;;  %v1846_v19 = vshrl.u32 %v6163_v60, 16  ;;  %v6221_v62 = vld [vmem:[%s6092_s18 + $0x48] sm:$0xff]   ;;  %v6230_v7 = vld [vmem:[%s6092_s18 + $0x50] sm:$0xff]  }
  0x22   : > { %v471_v16 = vsel %vm435_vm1, %v466_v4, %v470_v5  ;;  %5329 = vmatpush3.bf16.msra.mxu0 %v6108_v14  ;;  %v474_v25 = vor.u32 %v472_v13, %v470_v5  ;;  %v1849_v26 = vshll.u32 %v6163_v60, 16  ;;  %v480_v27 = vshrl.u32 %v6157_v55, 16 }
  0x23   : > { %v1835_v24 = vsel %vm1800_vm3, %v1825_v61, %v1834_v8  ;;  %v1843_v28 = vor.u32 %v1842_v17, %v1839_v9  ;;  %v478_v29 = vrot.slane %v476_v18, 1  ;;  %v1848_v31 = vrot.slane %v1846_v19, 1  ;;  %5885 = vmatprep.subr.msk.bf16.mxu0 %vm643_vm0, %v6173_v2  ;;  %v6218_v61 = vld [vmem:[%s6092_s18 + $0x48] sm:$0xff]   ;;  %v6238_v19 = vld [vmem:[%s6092_s18 + $0x50] sm:$0xff]  }
  0x24   : > { %5296 = vmatprep.mubr.msk.bf16.mxu0 %vm588_vm2, %v1835_v24  ;;  %v484_v32 = vshll.u32 %v6168_v1, 16  ;;  %v1851_v14 = vrot.slane %v1849_v26, 2  ;;  %v1855_v34 = vshrl.u32 %v6185_v23, 16  ;;  %v1858_v37 = vshll.u32 %v6185_v23, 16  ;;  %v6243_v26 = vld [vmem:[%s6092_s18 + $0x58] sm:$0xff]  }
  0x25   : > { %v488_v38 = vshrl.u32 %v6168_v1, 16  ;;  %v1844_v39 = vsel %vm1800_vm3, %v1834_v8, %v1843_v28  ;;  %v479_v40 = vsel %vm435_vm1, %v474_v25, %v478_v29  ;;  %v482_v41 = vor.u32 %v480_v27, %v478_v29 }
  0x26   : > { %5145 = vmatmul.mubr.msk.bf16.gmra.mrb[4].mxu1 %vm588_vm2, %v471_v16  ;;  %v486_v42 = vrot.slane %v484_v32, 1  ;;  %v1852_v44 = vor.u32 %v1851_v14, %v1848_v31  ;;  %v1857_v45 = vrot.slane %v1855_v34, 1  ;;  %v1860_v46 = vrot.slane %v1858_v37, 2 }
  0x27   : > { %5148 = vmatprep.mubr.msk.bf16.mxu1 %vm588_vm2, %v479_v40  ;;  %v492_v47 = vshll.u32 %v6194_v33, 16  ;;  %v1864_v53 = vshrl.u32 %v6205_v43, 16  ;;  %v1867_v54 = vshll.u32 %v6205_v43, 16  ;;  %v496_v59 = vshrl.u32 %v6194_v33, 16 }
  0x28   : > { %v487_v51 = vsel %vm435_vm1, %v482_v41, %v486_v42  ;;  %v490_v52 = vor.u32 %v488_v38, %v486_v42  ;;  %v1853_v56 = vsel %vm1800_vm3, %v1843_v28, %v1852_v44  ;;  %v1861_v57 = vor.u32 %v1860_v46, %v1857_v45  ;;  %v6248_v38 = vld [vmem:[%s6092_s18 + $0x58] sm:$0xff]  }
  0x29   : > { %v494_v58 = vrot.slane %v492_v47, 1  ;;  %5297 = vmatmul.mubr.msk.bf16.gmra.mrb[4].mxu0 %vm588_vm2, %v1844_v39  ;;  %v1866_v63 = vrot.slane %v1864_v53, 1  ;;  %v1869_v0 = vrot.slane %v1867_v54, 2  ;;  %v500_v3 = vshll.u32 %v6210_v48, 16 }
  0x2a   : > { %v504_v4 = vshrl.u32 %v6210_v48, 16  ;;  %5300 = vmatprep.mubr.msk.bf16.mxu0 %vm588_vm2, %v1853_v56  ;;  %v1873_v6 = vshrl.u32 %v6218_v61, 16  ;;  %v1876_v9 = vshll.u32 %v6218_v61, 16  ;;  %v508_v13 = vshll.u32 %v6221_v62, 16 }
  0x2b   : > { %v495_v5 = vsel %vm435_vm1, %v490_v52, %v494_v58  ;;  %v1870_v8 = vor.u32 %v1869_v0, %v1866_v63  ;;  %v502_v16 = vrot.slane %v500_v3, 1  ;;  %v1882_v17 = vshrl.u32 %v6230_v7, 16 }
  0x2c   : > { %v1885_v18 = vshll.u32 %v6230_v7, 16  ;;  %v1862_v24 = vsel %vm1800_vm3, %v1852_v44, %v1861_v57  ;;  %v498_v25 = vor.u32 %v496_v59, %v494_v58  ;;  %v1875_v27 = vrot.slane %v1873_v6, 1  ;;  %v6256_v44 = vld [vmem:[%s6092_s18 + $0x60] sm:$0xff]   ;;  %v6269_v58 = vld [vmem:[%s6092_s18 + $0x68] sm:$0xff]  }
  0x2d   : > { %v1878_v28 = vrot.slane %v1876_v9, 2  ;;  %v506_v29 = vor.u32 %v504_v4, %v502_v16  ;;  %v510_v31 = vrot.slane %v508_v13, 1  ;;  %v1871_v32 = vsel %vm1800_vm3, %v1861_v57, %v1870_v8  ;;  %v6266_v57 = vld [vmem:[%s6092_s18 + $0x60] sm:$0xff]   ;;  %v6274_v6 = vld [vmem:[%s6092_s18 + $0x68] sm:$0xff]  }
  0x2e   : > { %5149 = vmatmul.mubr.msk.bf16.gmra.mrb[8].mxu1 %vm588_vm2, %v487_v51  ;;  %v1884_v14 = vrot.slane %v1882_v17, 1  ;;  %v1887_v34 = vrot.slane %v1885_v18, 2  ;;  %v516_v37 = vshll.u32 %v6238_v19, 16  ;;  %v503_v39 = vsel %vm435_vm1, %v498_v25, %v502_v16  ;;  %v6278_v17 = vld [vmem:[%s6092_s18 + $0x70] sm:$0xff]  }
  0x2f   : > { %5152 = vmatprep.mubr.msk.bf16.mxu1 %vm588_vm2, %v495_v5  ;;  %v512_v40 = vshrl.u32 %v6221_v62, 16  ;;  %v1891_v41 = vshrl.u32 %v6243_v26, 16  ;;  %v1894_v42 = vshll.u32 %v6243_v26, 16  ;;  %v1879_v45 = vor.u32 %v1878_v28, %v1875_v27 }
  0x30   : > { %v511_v46 = vsel %vm435_vm1, %v506_v29, %v510_v31  ;;  %v520_v47 = vshrl.u32 %v6238_v19, 16  ;;  %v524_v51 = vshll.u32 %v6248_v38, 16  ;;  %v1888_v52 = vor.u32 %v1887_v34, %v1884_v14 }
  0x31   : > { %5301 = vmatmul.mubr.msk.bf16.gmra.mrb[8].mxu0 %vm588_vm2, %v1862_v24  ;;  %v1900_v53 = vshrl.u32 %v6256_v44, 16  ;;  %v1903_v54 = vshll.u32 %v6256_v44, 16  ;;  %v518_v56 = vrot.slane %v516_v37, 1  ;;  %v514_v59 = vor.u32 %v512_v40, %v510_v31 }
  0x32   : > { %5304 = vmatprep.mubr.msk.bf16.mxu0 %vm588_vm2, %v1871_v32  ;;  %v1893_v63 = vrot.slane %v1891_v41, 1  ;;  %v1896_v0 = vrot.slane %v1894_v42, 2  ;;  %v1880_v3 = vsel %vm1800_vm3, %v1870_v8, %v1879_v45  ;;  %v526_v5 = vrot.slane %v524_v51, 1  ;;  %v6294_v41 = vld [vmem:[%s6092_s18 + $0x70] sm:$0xff]  }
  0x33   : > { %v522_v4 = vor.u32 %v520_v47, %v518_v56  ;;  %v1889_v9 = vsel %vm1800_vm3, %v1879_v45, %v1888_v52  ;;  %v1902_v13 = vrot.slane %v1900_v53, 1  ;;  %v1905_v16 = vrot.slane %v1903_v54, 2  ;;  %v6302_v54 = vld [vmem:[%s6092_s18 + $0x78] sm:$0xff]  }
  0x34   : > { %v532_v18 = vshll.u32 %v6266_v57, 16  ;;  %v1909_v24 = vshrl.u32 %v6269_v58, 16  ;;  %v519_v25 = vsel %vm435_vm1, %v514_v59, %v518_v56  ;;  %v528_v8 = vshrl.u32 %v6248_v38, 16  ;;  %7330 = vst [vmem:[#allocation4_spill] sm:$0xff] %v6302_v54 }
  0x35   : > { %v1912_v27 = vshll.u32 %v6269_v58, 16  ;;  %v1897_v28 = vor.u32 %v1896_v0, %v1893_v63  ;;  %v527_v29 = vsel %vm435_vm1, %v522_v4, %v526_v5  ;;  %v536_v31 = vshrl.u32 %v6266_v57, 16  ;;  %v6306_v0 = vld [vmem:[%s6092_s18 + $0x80] sm:$0xff]  }
  0x36   : > { %5153 = vmatmul.mubr.msk.bf16.gmra.mrb[12].mxu1 %vm588_vm2, %v503_v39  ;;  %v540_v32 = vshll.u32 %v6274_v6, 16  ;;  %v1906_v14 = vor.u32 %v1905_v16, %v1902_v13  ;;  %v1918_v34 = vshrl.u32 %v6278_v17, 16  ;;  %v1921_v37 = vshll.u32 %v6278_v17, 16 }
  0x37   : > { %5156 = vmatprep.mubr.msk.bf16.mxu1 %vm588_vm2, %v511_v46  ;;  %v534_v39 = vrot.slane %v532_v18, 1  ;;  %v1911_v40 = vrot.slane %v1909_v24, 1  ;;  %v530_v42 = vor.u32 %v528_v8, %v526_v5  ;;  %v1914_v45 = vrot.slane %v1912_v27, 2  ;;  %v6298_v46 = vld [vmem:[%s6092_s18 + $0x78] sm:$0xff]  }
  0x38   : > { %v1898_v47 = vsel %vm1800_vm3, %v1888_v52, %v1897_v28  ;;  %v542_v53 = vrot.slane %v540_v32, 1  ;;  %v1907_v56 = vsel %vm1800_vm3, %v1897_v28, %v1906_v14  ;;  %v1920_v59 = vrot.slane %v1918_v34, 1 }
  0x39   : > { %5305 = vmatmul.mubr.msk.bf16.gmra.mrb[12].mxu0 %vm588_vm2, %v1880_v3  ;;  %v538_v51 = vor.u32 %v536_v31, %v534_v39  ;;  %v1923_v63 = vrot.slane %v1921_v37, 2  ;;  %v548_v3 = vshll.u32 %v6294_v41, 16  ;;  %v535_v4 = vsel %vm435_vm1, %v530_v42, %v534_v39  ;;  %v6326_v37 = vld [vmem:[%s6092_s18 + $0x88] sm:$0xff]  }
  0x3a   : > { %5308 = vmatprep.mubr.msk.bf16.mxu0 %vm588_vm2, %v1889_v9  ;;  %v544_v5 = vshrl.u32 %v6274_v6, 16  ;;  %v1927_v52 = vshrl.u32 %v6298_v46, 16  ;;  %v1930_v9 = vshll.u32 %v6298_v46, 16  ;;  %v1915_v13 = vor.u32 %v1914_v45, %v1911_v40  ;;  %v6330_v45 = vld [vmem:[%s6092_s18 + $0x88] sm:$0xff]  }
  0x3b   : > { %v543_v16 = vsel %vm435_vm1, %v538_v51, %v542_v53  ;;  %v552_v18 = vshrl.u32 %v6294_v41, 16  ;;  %v556_v24 = vshll.u32 %v6302_v54, 16  ;;  %v1936_v8 = vshrl.u32 %v6306_v0, 16 }
  0x3c   : > { %v1939_v27 = vshll.u32 %v6306_v0, 16  ;;  %v550_v28 = vrot.slane %v548_v3, 1  ;;  %v546_v31 = vor.u32 %v544_v5, %v542_v53  ;;  %v1929_v32 = vrot.slane %v1927_v52, 1 }
  0x3d   : > { %v1932_v34 = vrot.slane %v1930_v9, 2  ;;  %v1916_v39 = vsel %vm1800_vm3, %v1906_v14, %v1915_v13  ;;  %v558_v42 = vrot.slane %v556_v24, 1  ;;  %v1945_v5 = vshrl.u32 %v6326_v37, 16 }
  0x3e   : > { %5157 = vmatmul.mubr.msk.bf16.gmra.mrb[16].mxu1 %vm588_vm2, %v519_v25  ;;  %v1924_v25 = vor.u32 %v1923_v63, %v1920_v59  ;;  %v554_v40 = vor.u32 %v552_v18, %v550_v28  ;;  %v1941_v53 = vrot.slane %v1939_v27, 2  ;;  %v6339_v59 = vld [vmem:[%s6092_s18 + $0x90] sm:$0xff]   ;;  %v551_v63 = vsel %vm435_vm1, %v546_v31, %v550_v28  ;;  %v5942_v28 = vld [vmem:[%s6092_s18 + $0x98] ss:$0 sps:$4 sm:$0x33]  }
  0x3f   : > { %5160 = vmatprep.mubr.msk.bf16.mxu1 %vm588_vm2, %v527_v29  ;;  %v6322_v29 = vld [vmem:[%s6092_s18 + $0x80] sm:$0xff]   ;;  %v1933_v3 = vor.u32 %v1932_v34, %v1929_v32  ;;  %v1948_v9 = vshll.u32 %v6326_v37, 16  ;;  %v6354_v18 = vld [vmem:[%s6092_s18 + $0x90] ss:$0 sps:$4 sm:$0x11]   ;;  %v1957_v27 = vshll.u32 %v6339_v59, 16 }
  0x40   : > { %7331 = vst [vmem:[#allocation5_spill] sm:$0xff] %v6322_v29  ;;  %v1925_v51 = vsel %vm1800_vm3, %v1915_v13, %v1924_v25  ;;  %v564_v14 = vshll.u32 %v6322_v29, 16  ;;  %v559_v52 = vsel %vm435_vm1, %v554_v40, %v558_v42  ;;  %v568_v13 = vshrl.u32 %v6322_v29, 16 }
  0x41   : > { %5309 = vmatmul.mubr.msk.bf16.gmra.mrb[16].mxu0 %vm588_vm2, %v1898_v47  ;;  %v6335_v47 = vld [vmem:[%s7315_s2 + $0x4] sm:$0x3]  ;;  %v1947_v34 = vrot.slane %v1945_v5, 1  ;;  %v1950_v40 = vrot.slane %v1948_v9, 2  ;;  %v1959_v29 = vrot.slane %v1957_v27, 2  ;;  %v580_v10 = vshll.u32 %v6354_v18, 16 }
  0x42   : > { %5312 = vmatprep.mubr.msk.bf16.mxu0 %vm588_vm2, %v1907_v56  ;;  %v1938_v56 = vrot.slane %v1936_v8, 1  ;;  %5881 = vmatprep.subr.msk.bf16.mxu1 %vm643_vm0, %v6335_v47  ;;  %v1954_v8 = vshrl.u32 %v6339_v59, 16  ;;  %v566_v31 = vrot.slane %v564_v14, 1  ;;  %v1966_v5 = vshll.u32 %v5942_v28, 16  ;;  %v2241_v9 = vld [vmem:[%s6092_s18 + $0x8] sm:$0xc] }
  0x44   : > { %v1942_v24 = vor.u32 %v1941_v53, %v1938_v56  ;;  %v1956_v53 = vrot.slane %v1954_v8, 1  ;;  %v582_v8 = vrot.slane %v580_v10, 1 }
  0x46   : > { %5161 = vmatmul.mubr.msk.bf16.gmra.mrb[20].mxu1 %vm588_vm2, %v535_v4  ;;  %v560_v4 = vshrl.u32 %v6302_v54, 16  ;;  %v1943_v56 = vsel %vm1800_vm3, %v1933_v3, %v1942_v24  ;;  %v576_v54 = vshrl.u32 %v6330_v45, 16 }
  0x47   : > { %5164 = vmatprep.mubr.msk.bf16.mxu1 %vm588_vm2, %v543_v16  ;;  %v572_v16 = vshll.u32 %v6330_v45, 16 }
  0x48   : > { %v562_v32 = vor.u32 %v560_v4, %v558_v42  ;;  %v1963_v42 = vshrl.u32 %v5942_v28, 16 }
  0x49   : > { %5313 = vmatmul.mubr.msk.bf16.gmra.mrb[20].mxu0 %vm588_vm2, %v1916_v39  ;;  %v1934_v39 = vsel %vm1800_vm3, %v1924_v25, %v1933_v3  ;;  %v574_v22 = vrot.slane %v572_v16, 1  ;;  %v1951_v25 = vor.u32 %v1950_v40, %v1947_v34  ;;  %v2282_v3 = vrot.slane %v5942_v28, 2 }
  0x4a   : > { %5316 = vmatprep.mubr.msk.bf16.mxu0 %vm588_vm2, %v1925_v51  ;;  %v570_v51 = vor.u32 %v568_v13, %v566_v31  ;;  %v567_v14 = vsel %vm435_vm1, %v562_v32, %v566_v31  ;;  %v1965_v31 = vrot.slane %v1963_v42, 1  ;;  %v1968_v32 = vrot.slane %v1966_v5, 2 }
  0x4b   : > { %v578_v16 = vor.u32 %v576_v54, %v574_v22  ;;  %v1952_v27 = vsel %vm1800_vm3, %v1942_v24, %v1951_v25  ;;  %v4816_v28 = vcombine.low %v2241_v9, %v6111_v15  ;;  %v6395_v54 = vld [vmem:[%s7315_s2 + $0xc] ss:$0 sps:$4 sm:$0xcc]   ;;  %v2781_v24 = vsel %vm643_vm0, %v6173_v2, 0 }
  0x4c   : > { %v575_v4 = vsel %vm435_vm1, %v570_v51, %v574_v22  ;;  %v2248_v51 = vrot.slane %v6118_v20, 2  ;;  %v2250_v22 = vrot.slane %v6132_v30, 2  ;;  %v2252_v20 = vrot.slane %v6138_v36, 2 }
  0x4d   : > { %v583_v34 = vsel %vm435_vm1, %v578_v16, %v582_v8  ;;  %v2247_v40 = vrot.slane %v4816_v28, 2  ;;  %v2254_v36 = vrot.slane %v6151_v50, 2  ;;  %v6427_v50 = vld [vmem:[%s7315_s2 + $0x4] ss:$0 sps:$4 sm:$0xcc]   ;;  %v2260_v42 = vrot.slane %v6205_v43, 2 }
  0x4e   : > { %5165 = vmatmul.mubr.msk.bf16.gmra.mrb[24].mxu1 %vm588_vm2, %v551_v63  ;;  %v2280_v63 = vrot.slane %v6339_v59, 2  ;;  %v2251_v30 = vsel %vm2246_vm4, %v2248_v51, %v2250_v22  ;;  %v2264_v43 = vrot.slane %v6230_v7, 2  ;;  %v2266_v9 = vrot.slane %v6243_v26, 2  ;;  %v1040_v28 = vld [vmem:[%s6092_s18] sm:$0xe] }
  0x4f   : > { %5168 = vmatprep.mubr.msk.bf16.mxu1 %vm588_vm2, %v559_v52  ;;  %v1960_v52 = vor.u32 %v1959_v29, %v1956_v53  ;;  %v2249_v15 = vsel %vm2246_vm4, %v2247_v40, %v2248_v51  ;;  %v3175_v53 = vrot.slane %v6395_v54, 2  ;;  %v2255_v2 = vsel %vm2246_vm4, %v2252_v20, %v2254_v36  ;;  %v6491_v40 = vld [vmem:[%s6092_s18 + $0x14] sm:$0xf]  ;;  %v7334_v51 = vld [vmem:[#allocation5_spill] sm:$0xff] }
  0x50   : > { %v6375_v13 = vsel %vm2246_vm4, %v2280_v63, %v2282_v3  ;;  %v2267_v7 = vsel %vm2246_vm4, %v2264_v43, %v2266_v9  ;;  %v2270_v8 = vrot.slane %v6269_v58, 2  ;;  %v2272_v26 = vrot.slane %v6278_v17, 2 }
  0x51   : > { %5317 = vmatmul.mubr.msk.bf16.gmra.mrb[24].mxu0 %vm588_vm2, %v1934_v39  ;;  %v1961_v29 = vsel %vm1800_vm3, %v1951_v25, %v1960_v52  ;;  %v1969_v39 = vor.u32 %v1968_v32, %v1965_v31  ;;  %v1524_v25 = vrot.slane %v6427_v50, 2  ;;  %v2274_v58 = vrot.slane %v6298_v46, 2 }
  0x52   : > { %5320 = vmatprep.mubr.msk.bf16.mxu0 %vm588_vm2, %v1943_v56  ;;  %v2253_v56 = vsel %vm2246_vm4, %v2250_v22, %v2252_v20  ;;  %v2276_v17 = vrot.slane %v6306_v0, 2  ;;  %v2278_v46 = vrot.slane %v6326_v37, 2  ;;  %v1047_v22 = vrot.slane %v6104_v12, 1 }
  0x53   : > { %v1970_v10 = vsel %vm1800_vm3, %v1960_v52, %v1969_v39  ;;  %v2275_v31 = vsel %vm2246_vm4, %v2272_v26, %v2274_v58  ;;  %v2558_v39 = vld [vmem:[%s6092_s18 + $0x10] sm:$0xc]  ;;  %v3231_v50 = vsel %vm643_vm0, %v3175_v53, 0 }
  0x54   : > { %v2277_v32 = vsel %vm2246_vm4, %v2274_v58, %v2276_v17  ;;  %v2281_v20 = vsel %vm2246_vm4, %v2278_v46, %v2280_v63  ;;  %v1049_v63 = vrot.slane %v6121_v21, 1 }
  0x56   : > { %5169 = vmatmul.mubr.msk.bf16.gmra.mrb[28].mxu1 %vm588_vm2, %v567_v14 }
  0x57   : > { %5172 = vmatprep.mubr.msk.bf16.mxu1 %vm588_vm2, %v575_v4 }
  0x59   : > { %5321 = vmatmul.mubr.msk.bf16.gmra.mrb[28].mxu0 %vm588_vm2, %v1952_v27  ;;  %v2273_v27 = vsel %vm2246_vm4, %v2270_v8, %v2272_v26  ;;  %v6571_v26 = vld [vmem:[%s6092_s18 + $0x48] sm:$0xff]  }
  0x5a   : > { %5324 = vmatprep.mubr.msk.bf16.mxu0 %vm588_vm2, %v1961_v29  ;;  %v7332_v29 = vld [vmem:[#allocation2_spill] sm:$0xff]  ;;  %v2702_v58 = vrot.slane %v6571_v26, 2 }
  0x5b   : > { %v4740_v0 = vcombine.low %v1040_v28, %v7332_v29 }
  0x5e   : > { %5173 = vmatmul.mubr.msk.bf16.gmra.mrb[32].mxu1 %vm588_vm2, %v583_v34  ;;  %v7333_v34 = vld [vmem:[#allocation4_spill] sm:$0xff] }
  0x5f   : > { %5178 = vmatprep.mubr.msk.bf16.mxu1 %vm588_vm2, %v6101_v11  ;;  %v1138_v11 = vsel %vm643_vm0, %v6335_v47, 0  ;;  %v2256_v47 = vrot.slane %v6163_v60, 2  ;;  %v2258_v60 = vrot.slane %v6185_v23, 2  ;;  %v2262_v23 = vrot.slane %v6218_v61, 2 }
  0x60   : > { %v2268_v61 = vrot.slane %v6256_v44, 2 }
  0x61   : > { %5325 = vmatmul.mubr.msk.bf16.gmra.mrb[32].mxu0 %vm588_vm2, %v1970_v10  ;;  %v2257_v14 = vsel %vm2246_vm4, %v2254_v36, %v2256_v47  ;;  %v2259_v4 = vsel %vm2246_vm4, %v2256_v47, %v2258_v60  ;;  %v2261_v5 = vsel %vm2246_vm4, %v2258_v60, %v2260_v42  ;;  %v2263_v3 = vsel %vm2246_vm4, %v2260_v42, %v2262_v23  ;;  %v6516_v36 = vld [vmem:[%s6092_s18 + $0x20] sm:$0xff]  }
  0x62   : > { %5330 = vmatprep.mubr.msk.bf16.mxu0 %vm588_vm2, %v2249_v15  ;;  %v2265_v52 = vsel %vm2246_vm4, %v2262_v23, %v2264_v43  ;;  %v2269_v16 = vsel %vm2246_vm4, %v2266_v9, %v2268_v61  ;;  %v2271_v44 = vsel %vm2246_vm4, %v2268_v61, %v2270_v8  ;;  %v2279_v10 = vsel %vm2246_vm4, %v2276_v17, %v2278_v46  ;;  %v6538_v23 = vld [vmem:[%s6092_s18 + $0x30] sm:$0xff]   ;;  %v6589_v46 = vld [vmem:[%s6092_s18 + $0x58] sm:$0xff]  }
  0x63   : > { %v1046_v15 = vrot.slane %v4740_v0, 1  ;;  %v1051_v47 = vrot.slane %v6135_v35, 1  ;;  %v1050_v60 = vsel %vm1045_vm5, %v1047_v22, %v1049_v63  ;;  %v2692_v42 = vrot.slane %v6516_v36, 2 }
  0x64   : > { %v1055_v43 = vrot.slane %v6157_v55, 1  ;;  %v1057_v9 = vrot.slane %v6168_v1, 1 }
  0x66   : > { %5179 = vmatmul.mubr.msk.bf16.vlgmr.msra.gmra.mrb[0].mxu1 %vm588_vm2, %v6104_v12 }
  0x67   : > { %5182 = vmatprep.mubr.msk.bf16.mxu1 %vm588_vm2, %v6121_v21  ;;  %5215 = vmatpush3.bf16.msra.mxu1 %v1138_v11  ;;  %v6501_v11 = vcombine.low %v2558_v39, %v6491_v40  ;;  %v1052_v21 = vsel %vm1045_vm5, %v1049_v63, %v1051_v47  ;;  %v2706_v39 = vrot.slane %v6589_v46, 2 }
  0x68   : > { %5882 = vmatprep.subr.msk.bf16.mxu1 %vm643_vm0, %v1524_v25 }
  0x69   : > { %5331 = vmatmul.mubr.msk.bf16.vlgmr.msra.gmra.mrb[0].mxu0 %vm588_vm2, %v2251_v30  ;;  %v6504_v30 = vld [vmem:[%s6092_s18 + $0x18] sm:$0xff]  }
  0x6a   : > { %5367 = vmatpush3.bf16.msra.mxu0 %v2781_v24  ;;  %5334 = vmatprep.mubr.msk.bf16.mxu0 %vm588_vm2, %v2253_v56  ;;  %v1048_v24 = vsel %vm1045_vm5, %v1046_v15, %v1047_v22  ;;  %v2689_v56 = vrot.slane %v6501_v11, 2  ;;  %v2690_v12 = vrot.slane %v6504_v30, 2  ;;  %v6602_v15 = vld [vmem:[%s6092_s18 + $0x60] sm:$0xff]   ;;  %v1067_v22 = vrot.slane %v6248_v38, 1 }
  0x6b   : > { %5886 = vmatprep.subr.msk.bf16.mxu0 %vm643_vm0, %v3175_v53 }
  0x6e   : > { %5183 = vmatmul.mubr.msk.bf16.gmra.mrb[4].mxu1 %vm588_vm2, %v6135_v35  ;;  %v1580_v35 = vsel %vm643_vm0, %v1524_v25, 0 }
  0x6f   : > { %5186 = vmatprep.mubr.msk.bf16.mxu1 %vm588_vm2, %v6148_v49 }
  0x71   : > { %5335 = vmatmul.mubr.msk.bf16.gmra.mrb[4].mxu0 %vm588_vm2, %v2255_v2  ;;  %v2691_v2 = vsel %vm2246_vm4, %v2689_v56, %v2690_v12 }
  0x72   : > { %5338 = vmatprep.mubr.msk.bf16.mxu0 %vm588_vm2, %v2257_v14  ;;  %v6521_v14 = vld [vmem:[%s6092_s18 + $0x28] sm:$0xff]  }
  0x76   : > { %5187 = vmatmul.mubr.msk.bf16.gmra.mrb[8].mxu1 %vm588_vm2, %v6157_v55  ;;  %v2696_v55 = vrot.slane %v6538_v23, 2 }
  0x77   : > { %5190 = vmatprep.mubr.msk.bf16.mxu1 %vm588_vm2, %v6168_v1 }
  0x79   : > { %5339 = vmatmul.mubr.msk.bf16.gmra.mrb[8].mxu0 %vm588_vm2, %v2259_v4  ;;  %v2694_v4 = vrot.slane %v6521_v14, 2 }
  0x7a   : > { %5342 = vmatprep.mubr.msk.bf16.mxu0 %vm588_vm2, %v2261_v5  ;;  %v2693_v5 = vsel %vm2246_vm4, %v2690_v12, %v2692_v42 }
  0x7b   : > { %v2695_v25 = vsel %vm2246_vm4, %v2692_v42, %v2694_v4  ;;  %v2697_v61 = vsel %vm2246_vm4, %v2694_v4, %v2696_v55 }
  0x7e   : > { %5191 = vmatmul.mubr.msk.bf16.gmra.mrb[12].mxu1 %vm588_vm2, %v6194_v33 }
  0x7f   : > { %5194 = vmatprep.mubr.msk.bf16.mxu1 %vm588_vm2, %v6210_v48 }
  0x81   : > { %5343 = vmatmul.mubr.msk.bf16.gmra.mrb[12].mxu0 %vm588_vm2, %v2263_v3  ;;  %v6546_v3 = vld [vmem:[%s6092_s18 + $0x38] sm:$0xff]  }
  0x82   : > { %5346 = vmatprep.mubr.msk.bf16.mxu0 %vm588_vm2, %v2265_v52  ;;  %v2698_v53 = vrot.slane %v6546_v3, 2 }
  0x84   : > { %v2699_v8 = vsel %vm2246_vm4, %v2696_v55, %v2698_v53 }
  0x86   : > { %5195 = vmatmul.mubr.msk.bf16.gmra.mrb[16].mxu1 %vm588_vm2, %v6221_v62 }
  0x87   : > { %5198 = vmatprep.mubr.msk.bf16.mxu1 %vm588_vm2, %v6238_v19 }
  0x89   : > { %5347 = vmatmul.mubr.msk.bf16.gmra.mrb[16].mxu0 %vm588_vm2, %v2267_v7  ;;  %v6566_v7 = vld [vmem:[%s6092_s18 + $0x40] sm:$0xff]  }
  0x8a   : > { %5350 = vmatprep.mubr.msk.bf16.mxu0 %vm588_vm2, %v2269_v16  ;;  %v1059_v16 = vrot.slane %v6194_v33, 1  ;;  %v2700_v1 = vrot.slane %v6566_v7, 2  ;;  %v1061_v33 = vrot.slane %v6210_v48, 1 }
  0x8c   : > { %v2701_v17 = vsel %vm2246_vm4, %v2698_v53, %v2700_v1  ;;  %v2703_v28 = vsel %vm2246_vm4, %v2700_v1, %v2702_v58  ;;  %v1062_v29 = vsel %vm1045_vm5, %v1059_v16, %v1061_v33 }
  0x8e   : > { %5199 = vmatmul.mubr.msk.bf16.gmra.mrb[20].mxu1 %vm588_vm2, %v6248_v38  ;;  %v1069_v38 = vrot.slane %v6266_v57, 1 }
  0x8f   : > { %5202 = vmatprep.mubr.msk.bf16.mxu1 %vm588_vm2, %v6266_v57 }
  0x91   : > { %5351 = vmatmul.mubr.msk.bf16.gmra.mrb[20].mxu0 %vm588_vm2, %v2271_v44  ;;  %v1058_v44 = vsel %vm1045_vm5, %v1055_v43, %v1057_v9 }
  0x92   : > { %5354 = vmatprep.mubr.msk.bf16.mxu0 %vm588_vm2, %v2273_v27  ;;  %v1060_v27 = vsel %vm1045_vm5, %v1057_v9, %v1059_v16  ;;  %v1079_v16 = vrot.slane %v6330_v45, 1 }
  0x96   : > { %5203 = vmatmul.mubr.msk.bf16.gmra.mrb[24].mxu1 %vm588_vm2, %v6274_v6 }
  0x97   : > { %5206 = vmatprep.mubr.msk.bf16.mxu1 %vm588_vm2, %v6294_v41 }
  0x99   : > { %5355 = vmatmul.mubr.msk.bf16.gmra.mrb[24].mxu0 %vm588_vm2, %v2275_v31  ;;  %v6584_v31 = vld [vmem:[%s6092_s18 + $0x50] sm:$0xff]  }
  0x9a   : > { %5358 = vmatprep.mubr.msk.bf16.mxu0 %vm588_vm2, %v2277_v32  ;;  %v1063_v32 = vrot.slane %v6221_v62, 1  ;;  %v2704_v48 = vrot.slane %v6584_v31, 2  ;;  %v1065_v62 = vrot.slane %v6238_v19, 1  ;;  %v2708_v19 = vrot.slane %v6602_v15, 2 }
  0x9c   : > { %v1064_v0 = vsel %vm1045_vm5, %v1061_v33, %v1063_v32  ;;  %v1066_v56 = vsel %vm1045_vm5, %v1063_v32, %v1065_v62  ;;  %v1068_v12 = vsel %vm1045_vm5, %v1065_v62, %v1067_v22  ;;  %v3006_v33 = vshll.u32 %v6501_v11, 16 }
  0x9d   : > { %v3014_v32 = vshll.u32 %v6504_v30, 16 }
  0x9e   : > { %5207 = vmatmul.mubr.msk.bf16.gmra.mrb[28].mxu1 %vm588_vm2, %v7333_v34 }
  0x9f   : > { %5210 = vmatprep.mubr.msk.bf16.mxu1 %vm588_vm2, %v7334_v51 }
  0xa1   : > { %5359 = vmatmul.mubr.msk.bf16.gmra.mrb[28].mxu0 %vm588_vm2, %v2279_v10  ;;  %v2705_v10 = vsel %vm2246_vm4, %v2702_v58, %v2704_v48 }
  0xa2   : > { %5362 = vmatprep.mubr.msk.bf16.mxu0 %vm588_vm2, %v2281_v20  ;;  %v2707_v20 = vsel %vm2246_vm4, %v2704_v48, %v2706_v39 }
  0xa6   : > { %5211 = vmatmul.mubr.msk.bf16.gmra.mrb[32].mxu1 %vm588_vm2, %v6330_v45  ;;  %v3003_v45 = vshrl.u32 %v6501_v11, 16 }
  0xa7   : > { %5216 = vmatprep.mubr.msk.bf16.mxu1 %vm588_vm2, %v1048_v24  ;;  %v6607_v24 = vld [vmem:[%s6092_s18 + $0x68] sm:$0xff]  }
  0xa8   : > { %v2710_v63 = vrot.slane %v6607_v24, 2  ;;  %v3005_v11 = vrot.slane %v3003_v45, 2  ;;  %v5992_v45 = vld [vmem:[%s6092_s18 + $0x28] sm:$0xff]  }
  0xa9   : > { %5363 = vmatmul.mubr.msk.bf16.gmra.mrb[32].mxu0 %vm588_vm2, %v6375_v13  ;;  %v1053_v13 = vrot.slane %v6148_v49, 1  ;;  %v6551_v49 = vld [vmem:[%s7315_s2 + $0x10] sm:$0x3] }
  0xaa   : > { %5368 = vmatprep.mubr.msk.bf16.mxu0 %vm588_vm2, %v2691_v2  ;;  %v6620_v2 = vld [vmem:[%s6092_s18 + $0x70] sm:$0xff]   ;;  %v2711_v42 = vsel %vm2246_vm4, %v2708_v19, %v2710_v63 }
  0xab   : > { %v1054_v52 = vsel %vm1045_vm5, %v1051_v47, %v1053_v13  ;;  %v1056_v54 = vsel %vm1045_vm5, %v1053_v13, %v1055_v43  ;;  %v2709_v47 = vsel %vm2246_vm4, %v2706_v39, %v2708_v19  ;;  %v2712_v57 = vrot.slane %v6620_v2, 2  ;;  %v6638_v43 = vld [vmem:[%s6092_s18 + $0x80] sm:$0xff]   ;;  %v7335_v39 = vld [vmem:[#allocation3_spill] sm:$0xff] }
  0xac   : > { %v1484_v62 = vrot.slane %v7335_v39, 1  ;;  %v3016_v19 = vrot.slane %v3014_v32, 3 }
  0xae   : > { %5217 = vmatmul.mubr.msk.bf16.vlgmr.msra.gmra.mrb[0].mxu1 %vm588_vm2, %v1050_v60  ;;  %v1071_v60 = vrot.slane %v6274_v6, 1  ;;  %v1073_v6 = vrot.slane %v6294_v41, 1  ;;  %v2716_v41 = vrot.slane %v6638_v43, 2 }
  0xaf   : > { %5220 = vmatprep.mubr.msk.bf16.mxu1 %vm588_vm2, %v1052_v21  ;;  %5253 = vmatpush3.bf16.msra.mxu1 %v1580_v35  ;;  %v6625_v21 = vld [vmem:[%s6092_s18 + $0x78] sm:$0xff]   ;;  %v1070_v35 = vsel %vm1045_vm5, %v1067_v22, %v1069_v38 }
  0xb0   : > { %v1072_v4 = vsel %vm1045_vm5, %v1069_v38, %v1071_v60  ;;  %v2714_v13 = vrot.slane %v6625_v21, 2  ;;  %v1074_v55 = vsel %vm1045_vm5, %v1071_v60, %v1073_v6  ;;  %v3020_v38 = vshrl.u32 %v6516_v36, 16 }
  0xb1   : > { %5369 = vmatmul.mubr.msk.bf16.vlgmr.msra.gmra.mrb[0].mxu0 %vm588_vm2, %v2693_v5  ;;  %v2713_v5 = vsel %vm2246_vm4, %v2710_v63, %v2712_v57 }
  0xb2   : > { %5405 = vmatpush3.bf16.msra.mxu0 %v3231_v50  ;;  %5372 = vmatprep.mubr.msk.bf16.mxu0 %vm588_vm2, %v2695_v25  ;;  %v1075_v50 = vrot.slane %v7333_v34, 1  ;;  %v2715_v25 = vsel %vm2246_vm4, %v2712_v57, %v2714_v13  ;;  %v1077_v34 = vrot.slane %v7334_v51, 1  ;;  %v2717_v9 = vsel %vm2246_vm4, %v2714_v13, %v2716_v41 }
  0xb3   : > { %5887 = vmatprep.subr.msk.bf16.mxu0 %vm643_vm0, %v6551_v49  ;;  %v3032_v57 = vshll.u32 %v6521_v14, 16 }
  0xb4   : > { %v1078_v1 = vsel %vm1045_vm5, %v1075_v50, %v1077_v34 }
  0xb6   : > { %5221 = vmatmul.mubr.msk.bf16.gmra.mrb[4].mxu1 %vm588_vm2, %v1054_v52  ;;  %v6643_v52 = vld [vmem:[%s6092_s18 + $0x88] sm:$0xff]  }
  0xb7   : > { %5224 = vmatprep.mubr.msk.bf16.mxu1 %vm588_vm2, %v1056_v54  ;;  %v1076_v54 = vsel %vm1045_vm5, %v1073_v6, %v1075_v50  ;;  %v2718_v53 = vrot.slane %v6643_v52, 2 }
  0xb9   : > { %5373 = vmatmul.mubr.msk.bf16.gmra.mrb[4].mxu0 %vm588_vm2, %v2697_v61  ;;  %v6656_v61 = vld [vmem:[%s6092_s18 + $0x90] sm:$0xff]  }
  0xba   : > { %5376 = vmatprep.mubr.msk.bf16.mxu0 %vm588_vm2, %v2699_v8  ;;  %v6660_v8 = vld [vmem:[%s6092_s18 + $0x98] sm:$0xff]   ;;  %v2720_v51 = vrot.slane %v6656_v61, 2 }
  0xbb   : > { %v2722_v58 = vrot.slane %v6660_v8, 2 }
  0xbd   : > { %v2723_v48 = vsel %vm2246_vm4, %v2720_v51, %v2722_v58 }
  0xbe   : > { %5225 = vmatmul.mubr.msk.bf16.gmra.mrb[8].mxu1 %vm588_vm2, %v1058_v44  ;;  %v2719_v44 = vsel %vm2246_vm4, %v2716_v41, %v2718_v53 }
  0xbf   : > { %5228 = vmatprep.mubr.msk.bf16.mxu1 %vm588_vm2, %v1060_v27  ;;  %v1080_v27 = vsel %vm1045_vm5, %v1077_v34, %v1079_v16 }
  0xc1   : > { %5377 = vmatmul.mubr.msk.bf16.gmra.mrb[8].mxu0 %vm588_vm2, %v2701_v17  ;;  %v3011_v17 = vshrl.u32 %v6504_v30, 16 }
  0xc2   : > { %5380 = vmatprep.mubr.msk.bf16.mxu0 %vm588_vm2, %v2703_v28  ;;  %v1081_v28 = vrot.slane %v6354_v18, 1 }
  0xc6   : > { %5229 = vmatmul.mubr.msk.bf16.gmra.mrb[12].mxu1 %vm588_vm2, %v1062_v29  ;;  %v2721_v29 = vsel %vm2246_vm4, %v2718_v53, %v2720_v51  ;;  %v3034_v53 = vrot.slane %v3032_v57, 3 }
  0xc7   : > { %5232 = vmatprep.mubr.msk.bf16.mxu1 %vm588_vm2, %v1064_v0  ;;  %v5964_v0 = vld [vmem:[%s6092_s18 + $0xa0] ss:$0 sps:$4 sm:$0x33]  }
  0xc8   : > { %v2724_v18 = vrot.slane %v5964_v0, 2  ;;  %v3544_v0 = vsel %vm643_vm0, %v6551_v49, 0  ;;  %v3059_v49 = vshll.u32 %v6566_v7, 16 }
  0xc9   : > { %5381 = vmatmul.mubr.msk.bf16.gmra.mrb[12].mxu0 %vm588_vm2, %v2705_v10  ;;  %v5989_v10 = vld [vmem:[%s6092_s18 + $0x10] sm:$0xff]  }
  0xca   : > { %5384 = vmatprep.mubr.msk.bf16.mxu0 %vm588_vm2, %v2707_v20  ;;  %v1485_v22 = vrot.slane %v5989_v10, 1  ;;  %v3008_v20 = vrot.slane %v3006_v33, 3  ;;  %v2725_v6 = vsel %vm2246_vm4, %v2722_v58, %v2724_v18  ;;  %v3050_v58 = vshll.u32 %v6546_v3, 16 }
  0xcb   : > { %v1491_v33 = vrot.slane %v5992_v45, 1  ;;  %v3068_v18 = vshll.u32 %v6571_v26, 16 }
  0xcc   : > { %v1486_v63 = vsel %vm1045_vm5, %v1484_v62, %v1485_v22  ;;  %v3009_v60 = vor.u32 %v3008_v20, %v3005_v11  ;;  %v3052_v10 = vrot.slane %v3050_v58, 3 }
  0xce   : > { %5233 = vmatmul.mubr.msk.bf16.gmra.mrb[16].mxu1 %vm588_vm2, %v1066_v56  ;;  %v3013_v56 = vrot.slane %v3011_v17, 2 }
  0xcf   : > { %5236 = vmatprep.mubr.msk.bf16.mxu1 %vm588_vm2, %v1068_v12  ;;  %v1082_v12 = vsel %vm1045_vm5, %v1079_v16, %v1081_v28 }
  0xd1   : > { %5385 = vmatmul.mubr.msk.bf16.gmra.mrb[16].mxu0 %vm588_vm2, %v2709_v47  ;;  %v3023_v47 = vshll.u32 %v6516_v36, 16 }
  0xd2   : > { %5388 = vmatprep.mubr.msk.bf16.mxu0 %vm588_vm2, %v2711_v42  ;;  %v3017_v42 = vor.u32 %v3016_v19, %v3013_v56  ;;  %v3056_v56 = vshrl.u32 %v6566_v7, 16 }
  0xd3   : > { %v3025_v50 = vrot.slane %v3023_v47, 3 }
  0xd4   : > { %v3018_v41 = vsel %vm3001_vm6, %v3009_v60, %v3017_v42  ;;  %v3058_v60 = vrot.slane %v3056_v56, 2 }
  0xd6   : > { %5237 = vmatmul.mubr.msk.bf16.gmra.mrb[20].mxu1 %vm588_vm2, %v1070_v35  ;;  %v3029_v35 = vshrl.u32 %v6521_v14, 16 }
  0xd7   : > { %5240 = vmatprep.mubr.msk.bf16.mxu1 %vm588_vm2, %v1072_v4  ;;  %v5990_v4 = vld [vmem:[%s6092_s18 + $0x18] sm:$0xff]  }
  0xd8   : > { %v1487_v13 = vrot.slane %v5990_v4, 1 }
  0xd9   : > { %5389 = vmatmul.mubr.msk.bf16.gmra.mrb[20].mxu0 %vm588_vm2, %v2713_v5  ;;  %v3022_v5 = vrot.slane %v3020_v38, 2 }
  0xda   : > { %5392 = vmatprep.mubr.msk.bf16.mxu0 %vm588_vm2, %v2715_v25  ;;  %v5991_v25 = vld [vmem:[%s6092_s18 + $0x20] sm:$0xff]   ;;  %v1488_v34 = vsel %vm1045_vm5, %v1485_v22, %v1487_v13 }
  0xde   : > { %5241 = vmatmul.mubr.msk.bf16.gmra.mrb[24].mxu1 %vm588_vm2, %v1074_v55  ;;  %v1489_v55 = vrot.slane %v5991_v25, 1 }
  0xdf   : > { %5244 = vmatprep.mubr.msk.bf16.mxu1 %vm588_vm2, %v1076_v54  ;;  %v3031_v54 = vrot.slane %v3029_v35, 2  ;;  %v5995_v35 = vld [vmem:[%s6092_s18 + $0x40] sm:$0xff]  }
  0xe0   : > { %v1490_v16 = vsel %vm1045_vm5, %v1487_v13, %v1489_v55  ;;  %v1492_v22 = vsel %vm1045_vm5, %v1489_v55, %v1491_v33  ;;  %v1497_v57 = vrot.slane %v5995_v35, 1  ;;  %v3074_v55 = vshrl.u32 %v6584_v31, 16 }
  0xe1   : > { %5393 = vmatmul.mubr.msk.bf16.gmra.mrb[24].mxu0 %vm588_vm2, %v2717_v9  ;;  %v3026_v9 = vor.u32 %v3025_v50, %v3022_v5  ;;  %v3035_v51 = vor.u32 %v3034_v53, %v3031_v54  ;;  %v3083_v53 = vshrl.u32 %v6589_v46, 16  ;;  %v3110_v35 = vshrl.u32 %v6620_v2, 16 }
  0xe2   : > { %5396 = vmatprep.mubr.msk.bf16.mxu0 %vm588_vm2, %v2719_v44  ;;  %v3038_v44 = vshrl.u32 %v6538_v23, 16 }
  0xe3   : > { %v3027_v17 = vsel %vm3001_vm6, %v3017_v42, %v3026_v9  ;;  %v3036_v39 = vsel %vm3001_vm6, %v3026_v9, %v3035_v51  ;;  %v3061_v42 = vrot.slane %v3059_v49, 3  ;;  %v5996_v9 = vld [vmem:[%s6092_s18 + $0x48] sm:$0xff]  }
  0xe4   : > { %v3040_v32 = vrot.slane %v3038_v44, 2 }
  0xe5   : > { %v3062_v50 = vor.u32 %v3061_v42, %v3058_v60 }
  0xe6   : > { %5245 = vmatmul.mubr.msk.bf16.gmra.mrb[28].mxu1 %vm588_vm2, %v1078_v1  ;;  %v3041_v1 = vshll.u32 %v6538_v23, 16 }
  0xe7   : > { %5248 = vmatprep.mubr.msk.bf16.mxu1 %vm588_vm2, %v1080_v27  ;;  %v3047_v27 = vshrl.u32 %v6546_v3, 16 }
  0xe8   : > { %v3043_v28 = vrot.slane %v3041_v1, 3  ;;  %v3076_v1 = vrot.slane %v3074_v55, 2  ;;  %v3112_v55 = vrot.slane %v3110_v35, 2 }
  0xe9   : > { %5397 = vmatmul.mubr.msk.bf16.gmra.mrb[28].mxu0 %vm588_vm2, %v2721_v29  ;;  %v5993_v29 = vld [vmem:[%s6092_s18 + $0x30] sm:$0xff]   ;;  %v3049_v62 = vrot.slane %v3047_v27, 2 }
  0xea   : > { %5400 = vmatprep.mubr.msk.bf16.mxu0 %vm588_vm2, %v2723_v48  ;;  %v1493_v48 = vrot.slane %v5993_v29, 1  ;;  %v3044_v11 = vor.u32 %v3043_v28, %v3040_v32  ;;  %v5997_v27 = vld [vmem:[%s6092_s18 + $0x50] sm:$0xff]  }
  0xeb   : > { %v3053_v19 = vor.u32 %v3052_v10, %v3049_v62  ;;  %v1501_v58 = vrot.slane %v5997_v27, 1  ;;  %v3101_v62 = vshrl.u32 %v6607_v24, 16  ;;  %v3104_v10 = vshll.u32 %v6607_v24, 16 }
  0xec   : > { %v1494_v20 = vsel %vm1045_vm5, %v1491_v33, %v1493_v48  ;;  %v3045_v47 = vsel %vm3001_vm6, %v3035_v51, %v3044_v11  ;;  %v3085_v33 = vrot.slane %v3083_v53, 2  ;;  %v3128_v27 = vshrl.u32 %v6638_v43, 16 }
  0xed   : > { %v3054_v4 = vsel %vm3001_vm6, %v3044_v11, %v3053_v19  ;;  %v3063_v44 = vsel %vm3001_vm6, %v3053_v19, %v3062_v50  ;;  %v5999_v19 = vld [vmem:[%s6092_s18 + $0x60] sm:$0xff]  }
  0xee   : > { %5249 = vmatmul.mubr.msk.bf16.gmra.mrb[32].mxu1 %vm588_vm2, %v1082_v12  ;;  %v3065_v12 = vshrl.u32 %v6571_v26, 16 }
  0xef   : > { %5254 = vmatprep.mubr.msk.bf16.mxu1 %vm588_vm2, %v1486_v63  ;;  %v5994_v63 = vld [vmem:[%s6092_s18 + $0x38] sm:$0xff]  }
  0xf0   : > { %v1495_v38 = vrot.slane %v5994_v63, 1  ;;  %v3067_v13 = vrot.slane %v3065_v12, 2  ;;  %v1505_v12 = vrot.slane %v5999_v19, 1  ;;  %v3103_v63 = vrot.slane %v3101_v62, 2 }
  0xf1   : > { %5401 = vmatmul.mubr.msk.bf16.gmra.mrb[32].mxu0 %vm588_vm2, %v2725_v6  ;;  %v3070_v6 = vrot.slane %v3068_v18, 3  ;;  %v3146_v19 = vshrl.u32 %v6656_v61, 16 }
  0xf2   : > { %5406 = vmatprep.mubr.msk.bf16.mxu0 %vm588_vm2, %v3018_v41  ;;  %v1496_v5 = vsel %vm1045_vm5, %v1493_v48, %v1495_v38  ;;  %v1498_v25 = vsel %vm1045_vm5, %v1495_v38, %v1497_v57  ;;  %v3077_v41 = vshll.u32 %v6584_v31, 16  ;;  %v3092_v48 = vshrl.u32 %v6602_v15, 16 }
  0xf3   : > { %v3071_v54 = vor.u32 %v3070_v6, %v3067_v13  ;;  %v3106_v38 = vrot.slane %v3104_v10, 3  ;;  %v3119_v13 = vshrl.u32 %v6625_v21, 16  ;;  %v3122_v6 = vshll.u32 %v6625_v21, 16 }
  0xf4   : > { %v3079_v51 = vrot.slane %v3077_v41, 3  ;;  %v3094_v56 = vrot.slane %v3092_v48, 2  ;;  %v3130_v48 = vrot.slane %v3128_v27, 2 }
  0xf5   : > { %v3072_v45 = vsel %vm3001_vm6, %v3062_v50, %v3071_v54 }
  0xf6   : > { %5255 = vmatmul.mubr.msk.bf16.vlgmr.msra.gmra.mrb[0].mxu1 %vm588_vm2, %v1488_v34  ;;  %v3086_v34 = vshll.u32 %v6589_v46, 16  ;;  %v3080_v28 = vor.u32 %v3079_v51, %v3076_v1 }
  0xf7   : > { %5258 = vmatprep.mubr.msk.bf16.mxu1 %vm588_vm2, %v1490_v16  ;;  %v1499_v16 = vrot.slane %v5996_v9, 1  ;;  %v3121_v9 = vrot.slane %v3119_v13, 2 }
  0xf9   : > { %5407 = vmatmul.mubr.msk.bf16.vlgmr.msra.gmra.mrb[0].mxu0 %vm588_vm2, %v3027_v17  ;;  %v3088_v17 = vrot.slane %v3086_v34, 3  ;;  %v1500_v32 = vsel %vm1045_vm5, %v1497_v57, %v1499_v16  ;;  %v1502_v29 = vsel %vm1045_vm5, %v1499_v16, %v1501_v58  ;;  %v3113_v57 = vshll.u32 %v6620_v2, 16 }
  0xfa   : > { %5443 = vmatpush3.bf16.msra.mxu0 %v3544_v0  ;;  %5410 = vmatprep.mubr.msk.bf16.mxu0 %vm588_vm2, %v3036_v39  ;;  %v3095_v0 = vshll.u32 %v6602_v15, 16  ;;  %v3124_v16 = vrot.slane %v3122_v6, 3 }
  0xfb   : > { %v3089_v39 = vor.u32 %v3088_v17, %v3085_v33  ;;  %v3115_v41 = vrot.slane %v3113_v57, 3  ;;  %v3137_v33 = vshrl.u32 %v6643_v52, 16  ;;  %v3140_v17 = vshll.u32 %v6643_v52, 16 }
  0xfc   : > { %v3097_v49 = vrot.slane %v3095_v0, 3  ;;  %v1517_v57 = vrot.slane %v6339_v59, 1 }
  0xfd   : > { %v3090_v18 = vsel %vm3001_vm6, %v3080_v28, %v3089_v39  ;;  %v3116_v1 = vor.u32 %v3115_v41, %v3112_v55 }
  0xfe   : > { %5259 = vmatmul.mubr.msk.bf16.gmra.mrb[4].mxu1 %vm588_vm2, %v1492_v22  ;;  %v5998_v22 = vld [vmem:[%s6092_s18 + $0x58] sm:$0xff]   ;;  %v3098_v60 = vor.u32 %v3097_v49, %v3094_v56 }
  0xff   : > { %5262 = vmatprep.mubr.msk.bf16.mxu1 %vm588_vm2, %v1494_v20  ;;  %v1503_v11 = vrot.slane %v5998_v22, 1  ;;  %v3081_v20 = vsel %vm3001_vm6, %v3071_v54, %v3080_v28  ;;  %v6001_v54 = vld [vmem:[%s6092_s18 + $0x70] sm:$0xff]   ;;  %v3139_v22 = vrot.slane %v3137_v33, 2  ;;  %v3453_v33 = vrot.slane %v6504_v30, 3 }
 0x100   : > { %v1509_v53 = vrot.slane %v6001_v54, 1  ;;  %v3459_v30 = vrot.slane %v6538_v23, 3  ;;  %v3467_v23 = vrot.slane %v6584_v31, 3  ;;  %v5970_v31 = vld [vmem:[%s7317_s4 + $0x8] sm:$0xff]  }
 0x101   : > { %5411 = vmatmul.mubr.msk.bf16.gmra.mrb[4].mxu0 %vm588_vm2, %v3045_v47  ;;  %v1504_v47 = vsel %vm1045_vm5, %v1501_v58, %v1503_v11  ;;  %v1506_v42 = vsel %vm1045_vm5, %v1503_v11, %v1505_v12  ;;  %v3131_v58 = vshll.u32 %v6638_v43, 16  ;;  %v3142_v11 = vrot.slane %v3140_v17, 3 }
 0x102   : > { %5414 = vmatprep.mubr.msk.bf16.mxu0 %vm588_vm2, %v3054_v4  ;;  %v3107_v4 = vor.u32 %v3106_v38, %v3103_v63  ;;  %v3155_v63 = vshrl.u32 %v6660_v8, 16  ;;  %v3158_v38 = vshll.u32 %v6660_v8, 16 }
 0x103   : > { %v3133_v0 = vrot.slane %v3131_v58, 3 }
 0x104   : > { %v3108_v34 = vsel %vm3001_vm6, %v3098_v60, %v3107_v4  ;;  %v3157_v6 = vrot.slane %v3155_v63, 2  ;;  %v3479_v63 = vrot.slane %v6638_v43, 3  ;;  %v3485_v43 = vrot.slane %v6660_v8, 3  ;;  %v5974_v8 = vld [vmem:[%s7317_s4 + $0x28] sm:$0xff]  }
 0x105   : > { %v3134_v56 = vor.u32 %v3133_v0, %v3130_v48  ;;  %v3461_v0 = vrot.slane %v6546_v3, 3  ;;  %v5969_v3 = vld [vmem:[%s7317_s4] sm:$0xff]  }
 0x106   : > { %5263 = vmatmul.mubr.msk.bf16.gmra.mrb[8].mxu1 %vm588_vm2, %v1496_v5  ;;  %v6000_v5 = vld [vmem:[%s6092_s18 + $0x68] sm:$0xff]   ;;  %5480 = vmatprep.subr.bf16.mxu1 %v5969_v3 }
 0x107   : > { %5266 = vmatprep.mubr.msk.bf16.mxu1 %vm588_vm2, %v1498_v25  ;;  %v1507_v50 = vrot.slane %v6000_v5, 1  ;;  %v3099_v25 = vsel %vm3001_vm6, %v3089_v39, %v3098_v60  ;;  %v6003_v39 = vld [vmem:[%s6092_s18 + $0x80] sm:$0xff]   ;;  %v3160_v5 = vrot.slane %v3158_v38, 3  ;;  %5481 = vmatpush3.bf16.msra.mxu1 %v5969_v3  ;;  %v3481_v38 = vrot.slane %v6643_v52, 3 }
 0x108   : > { %v1513_v62 = vrot.slane %v6003_v39, 1  ;;  %5482 = vmatprep.subr.bf16.mxu1 %v5970_v31  ;;  %v5973_v52 = vld [vmem:[%s7317_s4 + $0x20] sm:$0xff]  }
 0x109   : > { %5415 = vmatmul.mubr.msk.bf16.gmra.mrb[8].mxu0 %vm588_vm2, %v3063_v44  ;;  %v1508_v44 = vsel %vm1045_vm5, %v1505_v12, %v1507_v50  ;;  %v1510_v51 = vsel %vm1045_vm5, %v1507_v50, %v1509_v53  ;;  %v3149_v12 = vshll.u32 %v6656_v61, 16  ;;  %v3161_v54 = vor.u32 %v3160_v5, %v3157_v6  ;;  %v4212_v5 = vld [vmem:[%s7314_s1] sm:$0xff] }
 0x10a   : > { %5418 = vmatprep.mubr.msk.bf16.mxu0 %vm588_vm2, %v3072_v45  ;;  %v3125_v45 = vor.u32 %v3124_v16, %v3121_v9  ;;  %v6012_v6 = vmov 0  }
 0x10b   : > { %v3151_v35 = vrot.slane %v3149_v12, 3  ;;  %5483 = vmatpush3.bf16.msra.mxu1 %v5970_v31  ;;  %v3477_v12 = vrot.slane %v6625_v21, 3  ;;  %5901 = vset.pattern.permute.xlu0 %v6012_v6  ;;  %v4235_v31 = vld [vmem:[%s7314_s1 + $0xb8] sm:$0xff] }
 0x10c   : > { %v3126_v10 = vsel %vm3001_vm6, %v3116_v1, %v3125_v45  ;;  %v3135_v60 = vsel %vm3001_vm6, %v3125_v45, %v3134_v56  ;;  %5902 = vset.pattern.permute.xlu1 %v6012_v6  ;;  %4250 = vperm.xlu0 %5901, %v4212_v5   ;;  %v4247_v6 = vld [vmem:[%s7314_s1 + $0x118] sm:$0xff] }
 0x10d   : > { %v3480_v21 = vsel %vm3451_vm7, %v3477_v12, %v3479_v63 }
 0x10e   : > { %5267 = vmatmul.mubr.msk.bf16.gmra.mrb[12].mxu1 %vm588_vm2, %v1500_v32  ;;  %v6002_v32 = vld [vmem:[%s6092_s18 + $0x78] sm:$0xff]  }
 0x10f   : > { %5270 = vmatprep.mubr.msk.bf16.mxu1 %vm588_vm2, %v1502_v29  ;;  %v1511_v28 = vrot.slane %v6002_v32, 1  ;;  %v3117_v29 = vsel %vm3001_vm6, %v3107_v4, %v3116_v1  ;;  %v6795_v4 = vld [vmem:[%s6092_s18 + $0xa0] ss:$0 sps:$4 sm:$0x77]  }
 0x110   : > { %v3164_v41 = vshrl.u32 %v6795_v4, 16  ;;  %v3167_v59 = vshll.u32 %v6795_v4, 16 }
 0x111   : > { %5419 = vmatmul.mubr.msk.bf16.gmra.mrb[12].mxu0 %vm588_vm2, %v3081_v20  ;;  %v1512_v20 = vsel %vm1045_vm5, %v1509_v53, %v1511_v28  ;;  %v1514_v49 = vsel %vm1045_vm5, %v1511_v28, %v1513_v62  ;;  %v3446_v53 = vld [vmem:[%s6092_s18 + $0x10] sm:$0x8]  ;;  %v3457_v28 = vrot.slane %v6521_v14, 3  ;;  %v3465_v14 = vrot.slane %v6571_v26, 3 }
 0x112   : > { %5422 = vmatprep.mubr.msk.bf16.mxu0 %vm588_vm2, %v3090_v18  ;;  %v3143_v18 = vor.u32 %v3142_v11, %v3139_v22  ;;  %v3166_v16 = vrot.slane %v3164_v41, 2  ;;  %v3469_v11 = vrot.slane %v6589_v46, 3  ;;  %v4217_v41 = vld [vmem:[%s7314_s1 + $0x28] sm:$0xff] }
 0x113   : > { %v3460_v39 = vsel %vm3451_vm7, %v3457_v28, %v3459_v30 }
 0x114   : > { %v3144_v13 = vsel %vm3001_vm6, %v3134_v56, %v3143_v18  ;;  %v3470_v26 = vsel %vm3451_vm7, %v3467_v23, %v3469_v11  ;;  %v3473_v56 = vrot.slane %v6607_v24, 3 }
 0x116   : > { %5271 = vmatmul.mubr.msk.bf16.gmra.mrb[16].mxu1 %vm588_vm2, %v1504_v47  ;;  %v1515_v47 = vrot.slane %v6326_v37, 1 }
 0x117   : > { %5274 = vmatprep.mubr.msk.bf16.mxu1 %vm588_vm2, %v1506_v42  ;;  %v3148_v42 = vrot.slane %v3146_v19, 2  ;;  %v3475_v19 = vrot.slane %v6620_v2, 3  ;;  %v5972_v2 = vld [vmem:[%s7317_s4 + $0x18] sm:$0xff]  }
 0x118   : > { %v1516_v50 = vsel %vm1045_vm5, %v1513_v62, %v1515_v47  ;;  %v1518_v55 = vsel %vm1045_vm5, %v1515_v47, %v1517_v57  ;;  %v3462_v62 = vsel %vm3451_vm7, %v3459_v30, %v3461_v0  ;;  %v3482_v47 = vsel %vm3451_vm7, %v3479_v63, %v3481_v38  ;;  %v4228_v30 = vld [vmem:[%s7314_s1 + $0x80] sm:$0xff] }
 0x119   : > { %5423 = vmatmul.mubr.msk.bf16.gmra.mrb[16].mxu0 %vm588_vm2, %v3099_v25  ;;  %v5966_v25 = vld [vmem:[%s6092_s18 + $0x98] ss:$0 sps:$4 sm:$0x11]   ;;  %v3152_v37 = vor.u32 %v3151_v35, %v3148_v42  ;;  %v3476_v24 = vsel %vm3451_vm7, %v3473_v56, %v3475_v19  ;;  %v4240_v63 = vld [vmem:[%s7314_s1 + $0xe0] sm:$0xff] }
 0x11a   : > { %5426 = vmatprep.mubr.msk.bf16.mxu0 %vm588_vm2, %v3108_v34  ;;  %v1519_v34 = vrot.slane %v5966_v25, 1  ;;  %v4213_v25 = vld [vmem:[%s7314_s1 + $0x8] sm:$0xff] }
 0x11b   : > { %v3153_v9 = vsel %vm3001_vm6, %v3143_v18, %v3152_v37  ;;  %v3162_v1 = vsel %vm3001_vm6, %v3152_v37, %v3161_v54  ;;  %v3478_v18 = vsel %vm3451_vm7, %v3475_v19, %v3477_v12  ;;  %4255 = vperm.xlu0 %5901, %v4213_v25   ;;  %v4215_v37 = vld [vmem:[%s7314_s1 + $0x18] sm:$0xff]  ;;  %v4238_v12 = vld [vmem:[%s7314_s1 + $0xd0] sm:$0xff] }
 0x11c   : > { %v1520_v27 = vsel %vm1045_vm5, %v1517_v57, %v1519_v34  ;;  %v3487_v57 = vrot.slane %v6795_v4, 3  ;;  %v5976_v4 = vld [vmem:[%s7317_s4 + $0x38] sm:$0xff]   ;;  %v4220_v34 = vld [vmem:[%s7314_s1 + $0x40] sm:$0xff] }
 0x11e   : > { %5275 = vmatmul.mubr.msk.bf16.gmra.mrb[20].mxu1 %vm588_vm2, %v1508_v44  ;;  %v3169_v44 = vrot.slane %v3167_v59, 3  ;;  %v4218_v59 = vld [vmem:[%s7314_s1 + $0x30] sm:$0xff] }
 0x11f   : > { %5278 = vmatprep.mubr.msk.bf16.mxu1 %vm588_vm2, %v1510_v51  ;;  %v4893_v51 = vcombine.low %v3446_v53, %v6491_v40  ;;  %v3455_v40 = vrot.slane %v6516_v36, 3  ;;  %v3463_v36 = vrot.slane %v6566_v7, 3  ;;  %v3468_v7 = vsel %vm3451_vm7, %v3465_v14, %v3467_v23  ;;  %v4219_v53 = vld [vmem:[%s7314_s1 + $0x38] sm:$0xff] }
 0x120   : > { %v3170_v58 = vor.u32 %v3169_v44, %v3166_v16 }
 0x121   : > { %5427 = vmatmul.mubr.msk.bf16.gmra.mrb[20].mxu0 %vm588_vm2, %v3117_v29  ;;  %v3452_v45 = vrot.slane %v4893_v51, 3  ;;  %v3456_v29 = vsel %vm3451_vm7, %v3453_v33, %v3455_v40  ;;  %v3458_v48 = vsel %vm3451_vm7, %v3455_v40, %v3457_v28  ;;  %v3466_v22 = vsel %vm3451_vm7, %v3463_v36, %v3465_v14  ;;  %v4222_v51 = vld [vmem:[%s7314_s1 + $0x50] sm:$0xff]  ;;  %v4225_v40 = vld [vmem:[%s7314_s1 + $0x68] sm:$0xff] }
 0x122   : > { %5430 = vmatprep.mubr.msk.bf16.mxu0 %vm588_vm2, %v3126_v10  ;;  %v3171_v17 = vsel %vm3001_vm6, %v3161_v54, %v3170_v58  ;;  %v3464_v10 = vsel %vm3451_vm7, %v3461_v0, %v3463_v36  ;;  %v4223_v58 = vld [vmem:[%s7314_s1 + $0x58] sm:$0xff]  ;;  %v4226_v28 = vld [vmem:[%s7314_s1 + $0x70] sm:$0xff]  ;;  %v4229_v36 = vld [vmem:[%s7314_s1 + $0x88] sm:$0xff] }
 0x123   : > { %v3454_v32 = vsel %vm3451_vm7, %v3452_v45, %v3453_v33  ;;  %v4224_v45 = vld [vmem:[%s7314_s1 + $0x60] sm:$0xff]  ;;  %v4230_v14 = vld [vmem:[%s7314_s1 + $0x90] sm:$0xff] }
 0x126   : > { %5279 = vmatmul.mubr.msk.bf16.gmra.mrb[24].mxu1 %vm588_vm2, %v1512_v20  ;;  %v3471_v20 = vrot.slane %v6602_v15, 3  ;;  %v5971_v15 = vld [vmem:[%s7317_s4 + $0x10] sm:$0xff]  }
 0x127   : > { %5282 = vmatprep.mubr.msk.bf16.mxu1 %vm588_vm2, %v1514_v49  ;;  %5484 = vmatprep.subr.bf16.mxu1 %v5971_v15 }
 0x128   : > { %v3472_v46 = vsel %vm3451_vm7, %v3469_v11, %v3471_v20  ;;  %v3474_v49 = vsel %vm3451_vm7, %v3471_v20, %v3473_v56  ;;  %5485 = vmatpush3.bf16.msra.mxu1 %v5971_v15  ;;  %v4236_v56 = vld [vmem:[%s7314_s1 + $0xc0] sm:$0xff]  ;;  %v4237_v15 = vld [vmem:[%s7314_s1 + $0xc8] sm:$0xff] }
 0x129   : > { %5431 = vmatmul.mubr.msk.bf16.gmra.mrb[24].mxu0 %vm588_vm2, %v3135_v60  ;;  %5486 = vmatprep.subr.bf16.mxu1 %v5972_v2  ;;  %v3483_v60 = vrot.slane %v6656_v61, 3  ;;  %v3488_v61 = vsel %vm3451_vm7, %v3485_v43, %v3487_v57 }
 0x12a   : > { %5434 = vmatprep.mubr.msk.bf16.mxu0 %vm588_vm2, %v3144_v13  ;;  %v5975_v13 = vld [vmem:[%s7317_s4 + $0x30] sm:$0xff]  }
 0x12b   : > { %v3484_v42 = vsel %vm3451_vm7, %v3481_v38, %v3483_v60  ;;  %v3486_v35 = vsel %vm3451_vm7, %v3483_v60, %v3485_v43  ;;  %v4242_v60 = vld [vmem:[%s7314_s1 + $0xf0] sm:$0xff] }
 0x12c   : > { %5487 = vmatpush3.bf16.msra.mxu1 %v5972_v2 }
 0x12d   : > { %5488 = vmatprep.subr.bf16.mxu1 %v5973_v52 }
 0x12e   : > { %5283 = vmatmul.mubr.msk.bf16.gmra.mrb[28].mxu1 %vm588_vm2, %v1516_v50  ;;  %v4214_v50 = vld [vmem:[%s7314_s1 + $0x10] sm:$0xff] }
 0x12f   : > { %5286 = vmatprep.mubr.msk.bf16.mxu1 %vm588_vm2, %v1518_v55  ;;  %4260 = vperm.xlu1 %5902, %v4214_v50   ;;  %v4216_v55 = vld [vmem:[%s7314_s1 + $0x20] sm:$0xff] }
 0x130   : > { %5489 = vmatpush3.bf16.msra.mxu1 %v5973_v52  ;;  %4270 = vperm.xlu0 %5901, %v4216_v55  }
 0x131   : > { %5435 = vmatmul.mubr.msk.bf16.gmra.mrb[28].mxu0 %vm588_vm2, %v3153_v9  ;;  %5490 = vmatprep.subr.bf16.mxu1 %v5974_v8 }
 0x132   : > { %5438 = vmatprep.mubr.msk.bf16.mxu0 %vm588_vm2, %v3162_v1  ;;  %v4221_v1 = vld [vmem:[%s7314_s1 + $0x48] sm:$0xff] }
 0x133   : > { %4265 = vperm.xlu1 %5902, %v4215_v37  }
 0x134   : > { %5491 = vmatpush3.bf16.msra.mxu1 %v5974_v8  ;;  %4280 = vperm.xlu0 %5901, %v4218_v59   ;;  %v4245_v8 = vld [vmem:[%s7314_s1 + $0x108] sm:$0xff] }
 0x135   : > { %5492 = vmatprep.subr.bf16.mxu1 %v5975_v13 }
 0x136   : > { %5287 = vmatmul.mubr.msk.bf16.gmra.mrb[32].mxu1 %vm588_vm2, %v1520_v27 }
 0x137   : > { %4275 = vperm.xlu1 %5902, %v4217_v41  }
 0x138   : > { %5493 = vmatpush3.bf16.msra.mxu1 %v5975_v13  ;;  %4290 = vperm.xlu0 %5901, %v4220_v34   ;;  %v4246_v13 = vld [vmem:[%s7314_s1 + $0x110] sm:$0xff] }
 0x139   : > { %5439 = vmatmul.mubr.msk.bf16.gmra.mrb[32].mxu0 %vm588_vm2, %v3171_v17  ;;  %5494 = vmatprep.subr.bf16.mxu1 %v5976_v4 }
 0x13a   : > { %5444 = vmatprep.mubr.msk.bf16.mxu0 %vm588_vm2, %v3454_v32 }
 0x13b   : > { %4285 = vperm.xlu1 %5902, %v4219_v53  }
 0x13c   : > { %5495 = vmatpush3.bf16.msra.mxu1 %v5976_v4  ;;  %4300 = vperm.xlu0 %5901, %v4222_v51  }
 0x13f   : > { %4295 = vperm.xlu1 %5902, %v4221_v1   ;;  %v7078_v1 = vld [vmem:[%s7316_s3] ss:$0 sm:$0xff] }
 0x140   : > { %4310 = vperm.xlu0 %5901, %v4224_v45  }
 0x141   : > { %5445 = vmatmul.mubr.msk.bf16.vlgmr.msra.gmra.mrb[0].mxu0 %vm588_vm2, %v3456_v29 }
 0x142   : > { %5448 = vmatprep.mubr.msk.bf16.mxu0 %vm588_vm2, %v3458_v48  ;;  %v4227_v48 = vld [vmem:[%s7314_s1 + $0x78] sm:$0xff] }
 0x143   : > { %4305 = vperm.xlu1 %5902, %v4223_v58  }
 0x144   : > { %4320 = vperm.xlu0 %5901, %v4226_v28  }
 0x147   : > { %4315 = vperm.xlu1 %5902, %v4225_v40  }
 0x148   : > { %4330 = vperm.xlu0 %5901, %v4228_v30  }
 0x149   : > { %5449 = vmatmul.mubr.msk.bf16.gmra.mrb[4].mxu0 %vm588_vm2, %v3460_v39 }
 0x14a   : > { %5452 = vmatprep.mubr.msk.bf16.mxu0 %vm588_vm2, %v3462_v62 }
 0x14b   : > { %4325 = vperm.xlu1 %5902, %v4227_v48  }
 0x14c   : > { %4340 = vperm.xlu0 %5901, %v4230_v14  }
 0x14f   : > { %4335 = vperm.xlu1 %5902, %v4229_v36  }
 0x151   : > { %5453 = vmatmul.mubr.msk.bf16.gmra.mrb[8].mxu0 %vm588_vm2, %v3464_v10  ;;  %v4231_v10 = vld [vmem:[%s7314_s1 + $0x98] sm:$0xff] }
 0x152   : > { %5456 = vmatprep.mubr.msk.bf16.mxu0 %vm588_vm2, %v3466_v22  ;;  %v4232_v22 = vld [vmem:[%s7314_s1 + $0xa0] sm:$0xff] }
 0x153   : > { %4345 = vperm.xlu1 %5902, %v4231_v10   ;;  %4350 = vperm.xlu0 %5901, %v4232_v22  }
 0x159   : > { %5457 = vmatmul.mubr.msk.bf16.gmra.mrb[12].mxu0 %vm588_vm2, %v3468_v7  ;;  %v4233_v7 = vld [vmem:[%s7314_s1 + $0xa8] sm:$0xff] }
 0x15a   : > { %5460 = vmatprep.mubr.msk.bf16.mxu0 %vm588_vm2, %v3470_v26  ;;  %v4234_v26 = vld [vmem:[%s7314_s1 + $0xb0] sm:$0xff]  ;;  %4355 = vperm.xlu1 %5902, %v4233_v7  }
 0x15b   : > { %4360 = vperm.xlu0 %5901, %v4234_v26  }
 0x15e   : > { %4365 = vperm.xlu1 %5902, %v4235_v31  }
 0x15f   : > { %4370 = vperm.xlu0 %5901, %v4236_v56  }
 0x161   : > { %5461 = vmatmul.mubr.msk.bf16.gmra.mrb[16].mxu0 %vm588_vm2, %v3472_v46 }
 0x162   : > { %5464 = vmatprep.mubr.msk.bf16.mxu0 %vm588_vm2, %v3474_v49  ;;  %4375 = vperm.xlu1 %5902, %v4237_v15  }
 0x163   : > { %4380 = vperm.xlu0 %5901, %v4238_v12  }
 0x167   : > { %4390 = vperm.xlu0 %5901, %v4240_v63  }
 0x169   : > { %5465 = vmatmul.mubr.msk.bf16.gmra.mrb[20].mxu0 %vm588_vm2, %v3476_v24 }
 0x16a   : > { %5468 = vmatprep.mubr.msk.bf16.mxu0 %vm588_vm2, %v3478_v18  ;;  %v4239_v18 = vld [vmem:[%s7314_s1 + $0xd8] sm:$0xff] }
 0x16b   : > { %4385 = vperm.xlu1 %5902, %v4239_v18   ;;  %4400 = vperm.xlu0 %5901, %v4242_v60  }
 0x171   : > { %5469 = vmatmul.mubr.msk.bf16.gmra.mrb[24].mxu0 %vm588_vm2, %v3480_v21 }
 0x172   : > { %5472 = vmatprep.mubr.msk.bf16.mxu0 %vm588_vm2, %v3482_v47  ;;  %v4241_v47 = vld [vmem:[%s7314_s1 + $0xe8] sm:$0xff] }
 0x173   : > { %4395 = vperm.xlu1 %5902, %v4241_v47  }
 0x179   : > { %5473 = vmatmul.mubr.msk.bf16.gmra.mrb[28].mxu0 %vm588_vm2, %v3484_v42  ;;  %v4243_v42 = vld [vmem:[%s7314_s1 + $0xf8] sm:$0xff] }
 0x17a   : > { %5476 = vmatprep.mubr.msk.bf16.mxu0 %vm588_vm2, %v3486_v35  ;;  %v4244_v35 = vld [vmem:[%s7314_s1 + $0x100] sm:$0xff]  ;;  %4405 = vperm.xlu1 %5902, %v4243_v42  }
 0x17b   : > { %4410 = vperm.xlu0 %5901, %v4244_v35  }
 0x17e   : > { %4415 = vperm.xlu1 %5902, %v4245_v8  }
 0x17f   : > { %4420 = vperm.xlu0 %5901, %v4246_v13  }
 0x181   : > { %5477 = vmatmul.mubr.msk.bf16.gmra.mrb[32].mxu0 %vm588_vm2, %v3488_v61 }
 0x182   : > { %4425 = vperm.xlu1 %5902, %v4247_v6  }
 0x1c9   : > { %v6916_v54 = vpop.f32.mrb[0].mxu1 }
 0x1ca   : > { %v6924_v9 = vpop.f32.mrb[1].mxu1 }
 0x1cb   : > { %v6926_v16 = vpop.f32.mrb[2].mxu1 }
 0x1cc   : > { %v6928_v44 = vpop.f32.mrb[3].mxu1 }
 0x1d1   : > { %v6936_v27 = vpop.f32.mrb[4].mxu1 }
 0x1d2   : > { %v6944_v33 = vpop.f32.mrb[5].mxu1 }
 0x1d3   : > { %v6946_v17 = vpop.f32.mrb[6].mxu1 }
 0x1d4   : > { %v6948_v32 = vpop.f32.mrb[7].mxu1 }
 0x1d9   : > { %v6956_v29 = vpop.f32.mrb[8].mxu1 }
 0x1da   : > { %v6964_v0 = vpop.f32.mrb[9].mxu1 }
 0x1db   : > { %v6966_v39 = vpop.f32.mrb[10].mxu1 }
 0x1dc   : > { %v6968_v62 = vpop.f32.mrb[11].mxu1 }
 0x1e1   : > { %v6982_v23 = vpop.f32.mrb[12].mxu1 }
 0x1e2   : > { %v6984_v3 = vpop.f32.mrb[13].mxu1 }
 0x1e3   : > { %v6986_v11 = vpop.f32.mrb[14].mxu1 }
 0x1e4   : > { %v6994_v20 = vpop.f32.mrb[15].mxu1 }
 0x1e9   : > { %v7002_v46 = vpop.f32.mrb[16].mxu1 }
 0x1ea   : > { %v7004_v49 = vpop.f32.mrb[17].mxu1 }
 0x1eb   : > { %v7006_v19 = vpop.f32.mrb[18].mxu1 }
 0x1ec   : > { %v7014_v24 = vpop.f32.mrb[19].mxu1 }
 0x1f1   : > { %v7022_v2 = vpop.f32.mrb[20].mxu1 }
 0x1f2   : > { %v7024_v38 = vpop.f32.mrb[21].mxu1 }
 0x1f3   : > { %v7026_v21 = vpop.f32.mrb[22].mxu1 }
 0x1f4   : > { %v7034_v43 = vpop.f32.mrb[23].mxu1 }
 0x1f9   : > { %v7042_v52 = vpop.f32.mrb[24].mxu1 }
 0x1fa   : > { %v7044_v57 = vpop.f32.mrb[25].mxu1 }
 0x1fb   : > { %v7046_v61 = vpop.f32.mrb[26].mxu1 }
 0x1fc   : > { %v7054_v4 = vpop.f32.mrb[27].mxu1 }
 0x201   : > { %v7059_v5 = vpop.f32.mrb[28].mxu1 }
 0x202   : > { %v7061_v50 = vpop.f32.mrb[29].mxu1 }
 0x203   : > { %v7063_v25 = vpop.f32.mrb[30].mxu1 }
 0x204   : > { %v7065_v37 = vpop.f32.mrb[31].mxu1 }
 0x209   : > { %v7067_v55 = vpop.f32.mrb[32].mxu1 }
 0x20a   : > { %v7069_v41 = vpop.f32.mrb[33].mxu1 }
 0x20b   : > { %v7071_v59 = vpop.f32.mrb[34].mxu1 }
 0x20c   : > { %v7073_v53 = vpop.f32.mrb[35].mxu1 }
 0x214   : > { %v5446_v34 = vpop.f32.mrb[0].mxu0 }
 0x215   : > { %v5591_v51 = vadd.f32 %v5446_v34, %v6916_v54  ;;  %v3580_v58 = vpop.f32.mrb[1].mxu0 }
 0x216   : > { %v5592_v45 = vadd.f32 %v3580_v58, %v6924_v9  ;;  %v5447_v40 = vpop.f32.mrb[2].mxu0 }
 0x217   : > { %v3768_v28 = vadd.f32 %v5591_v51, %v7078_v1  ;;  %v5593_v48 = vadd.f32 %v5447_v40, %v6926_v16  ;;  %v3583_v30 = vpop.f32.mrb[3].mxu0 }
 0x218   : > { %v3766_v36 = vadd.f32 %v5592_v45, %v7078_v1  ;;  %v5594_v14 = vadd.f32 %v3583_v30, %v6928_v44 }
 0x219   : > { %v3769_v10 = vadd.f32 %v5593_v48, %v7078_v1  ;;  %v3804_v7 = vmax.f32 %v3768_v28, 0.0 }
 0x21a   : > { %v3767_v22 = vadd.f32 %v5594_v14, %v7078_v1  ;;  %v3802_v54 = vmax.f32 %v3766_v36, 0.0 }
 0x21b   : > { %v3805_v26 = vmax.f32 %v3769_v10, 0.0 }
 0x21c   : > { %v3803_v31 = vmax.f32 %v3767_v22, 0.0  ;;  %v5450_v56 = vpop.f32.mrb[4].mxu0 }
 0x21d   : > { %v3839_v9 = vpack.c.bf16 %v3805_v26, %v3804_v7  ;;  %v5595_v15 = vadd.f32 %v5450_v56, %v6936_v27  ;;  %v3596_v12 = vpop.f32.mrb[5].mxu0 }
 0x21e   : > { %v5596_v16 = vadd.f32 %v3596_v12, %v6944_v33  ;;  %v5451_v18 = vpop.f32.mrb[6].mxu0  ;;  %v3838_v63 = vpack.c.bf16 %v3803_v31, %v3802_v54 }
 0x21f   : > { %v3772_v47 = vadd.f32 %v5595_v15, %v7078_v1  ;;  %v5597_v44 = vadd.f32 %v5451_v18, %v6946_v17  ;;  %v3599_v60 = vpop.f32.mrb[7].mxu0 }
 0x220   : > { %v3770_v42 = vadd.f32 %v5596_v16, %v7078_v1  ;;  %v5598_v35 = vadd.f32 %v3599_v60, %v6948_v32  ;;  %5496 = vmatprep.mubr.bf16.mxu1 %v3838_v63 }
 0x221   : > { %v3773_v8 = vadd.f32 %v5597_v44, %v7078_v1  ;;  %5497 = vmatmul.mubr.bf16.vlgmr.msra.gmra.mrb[36].mxu1 %v3839_v9  ;;  %v3808_v13 = vmax.f32 %v3772_v47, 0.0 }
 0x222   : > { %v3771_v27 = vadd.f32 %v5598_v35, %v7078_v1  ;;  %v3806_v33 = vmax.f32 %v3770_v42, 0.0 }
 0x223   : > { %v3809_v6 = vmax.f32 %v3773_v8, 0.0 }
 0x224   : > { %v3807_v34 = vmax.f32 %v3771_v27, 0.0  ;;  %v5454_v51 = vpop.f32.mrb[8].mxu0 }
 0x225   : > { %v5599_v58 = vadd.f32 %v5454_v51, %v6956_v29  ;;  %v3612_v45 = vpop.f32.mrb[9].mxu0  ;;  %v3841_v17 = vpack.c.bf16 %v3809_v6, %v3808_v13 }
 0x226   : > { %v5600_v40 = vadd.f32 %v3612_v45, %v6964_v0  ;;  %v5455_v28 = vpop.f32.mrb[10].mxu0  ;;  %v3840_v48 = vpack.c.bf16 %v3807_v34, %v3806_v33 }
 0x227   : > { %v3776_v32 = vadd.f32 %v5599_v58, %v7078_v1  ;;  %v5601_v30 = vadd.f32 %v5455_v28, %v6966_v39  ;;  %v3615_v36 = vpop.f32.mrb[11].mxu0 }
 0x228   : > { %v3774_v14 = vadd.f32 %v5600_v40, %v7078_v1  ;;  %v5602_v10 = vadd.f32 %v3615_v36, %v6968_v62  ;;  %5500 = vmatprep.mubr.bf16.mxu1 %v3840_v48 }
 0x229   : > { %v3777_v22 = vadd.f32 %v5601_v30, %v7078_v1  ;;  %5501 = vmatmul.mubr.bf16.gmra.mrb[40].mxu1 %v3841_v17  ;;  %v3812_v7 = vmax.f32 %v3776_v32, 0.0 }
 0x22a   : > { %v3775_v29 = vadd.f32 %v5602_v10, %v7078_v1  ;;  %v3810_v0 = vmax.f32 %v3774_v14, 0.0 }
 0x22b   : > { %v3813_v26 = vmax.f32 %v3777_v22, 0.0 }
 0x22c   : > { %v3811_v54 = vmax.f32 %v3775_v29, 0.0  ;;  %v5458_v31 = vpop.f32.mrb[12].mxu0 }
 0x22d   : > { %v5603_v56 = vadd.f32 %v5458_v31, %v6982_v23  ;;  %v3628_v9 = vpop.f32.mrb[13].mxu0  ;;  %v3843_v39 = vpack.c.bf16 %v3813_v26, %v3812_v7 }
 0x22e   : > { %v5604_v15 = vadd.f32 %v3628_v9, %v6984_v3  ;;  %v5459_v12 = vpop.f32.mrb[14].mxu0  ;;  %v3842_v16 = vpack.c.bf16 %v3811_v54, %v3810_v0 }
 0x22f   : > { %v3780_v62 = vadd.f32 %v5603_v56, %v7078_v1  ;;  %v5605_v18 = vadd.f32 %v5459_v12, %v6986_v11  ;;  %v3631_v63 = vpop.f32.mrb[15].mxu0 }
 0x230   : > { %v3778_v47 = vadd.f32 %v5604_v15, %v7078_v1  ;;  %v5606_v44 = vadd.f32 %v3631_v63, %v6994_v20  ;;  %5504 = vmatprep.mubr.bf16.mxu1 %v3842_v16 }
 0x231   : > { %v3781_v60 = vadd.f32 %v5605_v18, %v7078_v1  ;;  %5505 = vmatmul.mubr.bf16.gmra.mrb[44].mxu1 %v3843_v39  ;;  %v3816_v42 = vmax.f32 %v3780_v62, 0.0 }
 0x232   : > { %v3779_v23 = vadd.f32 %v5606_v44, %v7078_v1  ;;  %v3814_v3 = vmax.f32 %v3778_v47, 0.0 }
 0x233   : > { %v3817_v35 = vmax.f32 %v3781_v60, 0.0 }
 0x234   : > { %v3815_v8 = vmax.f32 %v3779_v23, 0.0  ;;  %v5462_v27 = vpop.f32.mrb[16].mxu0 }
 0x235   : > { %v5607_v13 = vadd.f32 %v5462_v27, %v7002_v46  ;;  %v3644_v6 = vpop.f32.mrb[17].mxu0  ;;  %v3845_v11 = vpack.c.bf16 %v3817_v35, %v3816_v42 }
 0x236   : > { %v5608_v33 = vadd.f32 %v3644_v6, %v7004_v49  ;;  %v5463_v34 = vpop.f32.mrb[18].mxu0  ;;  %v3844_v51 = vpack.c.bf16 %v3815_v8, %v3814_v3 }
 0x237   : > { %v3784_v20 = vadd.f32 %v5607_v13, %v7078_v1  ;;  %v5609_v58 = vadd.f32 %v5463_v34, %v7006_v19  ;;  %v3647_v45 = vpop.f32.mrb[19].mxu0 }
 0x238   : > { %v3782_v17 = vadd.f32 %v5608_v33, %v7078_v1  ;;  %v5610_v40 = vadd.f32 %v3647_v45, %v7014_v24  ;;  %5508 = vmatprep.mubr.bf16.mxu1 %v3844_v51 }
 0x239   : > { %v3785_v28 = vadd.f32 %v5609_v58, %v7078_v1  ;;  %5509 = vmatmul.mubr.bf16.gmra.mrb[48].mxu1 %v3845_v11  ;;  %v3820_v48 = vmax.f32 %v3784_v20, 0.0 }
 0x23a   : > { %v3783_v46 = vadd.f32 %v5610_v40, %v7078_v1  ;;  %v3818_v49 = vmax.f32 %v3782_v17, 0.0 }
 0x23b   : > { %v3821_v32 = vmax.f32 %v3785_v28, 0.0 }
 0x23c   : > { %v3819_v30 = vmax.f32 %v3783_v46, 0.0  ;;  %v5466_v36 = vpop.f32.mrb[20].mxu0 }
 0x23d   : > { %v5611_v14 = vadd.f32 %v5466_v36, %v7022_v2  ;;  %v3660_v10 = vpop.f32.mrb[21].mxu0  ;;  %v3847_v19 = vpack.c.bf16 %v3821_v32, %v3820_v48 }
 0x23e   : > { %v5612_v22 = vadd.f32 %v3660_v10, %v7024_v38  ;;  %v5467_v29 = vpop.f32.mrb[22].mxu0  ;;  %v3846_v7 = vpack.c.bf16 %v3819_v30, %v3818_v49 }
 0x23f   : > { %v3788_v24 = vadd.f32 %v5611_v14, %v7078_v1  ;;  %v5613_v26 = vadd.f32 %v5467_v29, %v7026_v21  ;;  %v3663_v0 = vpop.f32.mrb[23].mxu0 }
 0x240   : > { %v3786_v54 = vadd.f32 %v5612_v22, %v7078_v1  ;;  %v5614_v31 = vadd.f32 %v3663_v0, %v7034_v43  ;;  %5512 = vmatprep.mubr.bf16.mxu1 %v3846_v7 }
 0x241   : > { %v3789_v56 = vadd.f32 %v5613_v26, %v7078_v1  ;;  %5513 = vmatmul.mubr.bf16.gmra.mrb[52].mxu1 %v3847_v19  ;;  %v3824_v9 = vmax.f32 %v3788_v24, 0.0 }
 0x242   : > { %v3787_v2 = vadd.f32 %v5614_v31, %v7078_v1  ;;  %v3822_v38 = vmax.f32 %v3786_v54, 0.0 }
 0x243   : > { %v3825_v39 = vmax.f32 %v3789_v56, 0.0 }
 0x244   : > { %v3823_v15 = vmax.f32 %v3787_v2, 0.0  ;;  %v5470_v12 = vpop.f32.mrb[24].mxu0  ;;  %v7152_v2 = vpop.permute.xlu1 %4260 }
 0x245   : > { %v5615_v16 = vadd.f32 %v5470_v12, %v7042_v52  ;;  %v3676_v62 = vpop.f32.mrb[25].mxu0  ;;  %v3849_v21 = vpack.c.bf16 %v3825_v39, %v3824_v9  ;;  %v7167_v12 = vld [vmem:[%s7318_s5] ss:$0 sm:$0xff] }
 0x246   : > { %v5616_v18 = vadd.f32 %v3676_v62, %v7044_v57  ;;  %v5471_v63 = vpop.f32.mrb[26].mxu0  ;;  %v3848_v47 = vpack.c.bf16 %v3823_v15, %v3822_v38 }
 0x247   : > { %v3792_v43 = vadd.f32 %v5615_v16, %v7078_v1  ;;  %v5617_v44 = vadd.f32 %v5471_v63, %v7046_v61  ;;  %v3679_v60 = vpop.f32.mrb[27].mxu0 }
 0x248   : > { %v3790_v23 = vadd.f32 %v5616_v18, %v7078_v1  ;;  %v5618_v42 = vadd.f32 %v3679_v60, %v7054_v4  ;;  %5516 = vmatprep.mubr.bf16.mxu1 %v3848_v47  ;;  %v7154_v39 = vpop.permute.xlu1 %4265  ;;  %v4528_v47 = vld [vmem:[%s7319_s6] sm:$0xff] }
 0x249   : > { %v3793_v35 = vadd.f32 %v5617_v44, %v7078_v1  ;;  %5517 = vmatmul.mubr.bf16.gmra.mrb[56].mxu1 %v3849_v21  ;;  %v3828_v3 = vmax.f32 %v3792_v43, 0.0  ;;  %v4529_v43 = vld [vmem:[%s7319_s6 + $0x8] sm:$0xff]  ;;  %v4530_v44 = vld [vmem:[%s7319_s6 + $0x10] sm:$0xff] }
 0x24a   : > { %v3791_v52 = vadd.f32 %v5618_v42, %v7078_v1  ;;  %v3826_v57 = vmax.f32 %v3790_v23, 0.0  ;;  %v6013_v42 = vmov 0.0|0.0  }
 0x24b   : > { %v3829_v8 = vmax.f32 %v3793_v35, 0.0  ;;  %5567 = vmatprep.subr.bf16.mxu1 %v6013_v42  ;;  %v5568_v35 = vpack.c.bf16 %v4529_v43, %v4528_v47 }
 0x24c   : > { %v3827_v27 = vmax.f32 %v3791_v52, 0.0  ;;  %v5474_v13 = vpop.f32.mrb[28].mxu0  ;;  %v7158_v38 = vpop.permute.xlu1 %4275  ;;  %v4531_v52 = vld [vmem:[%s7319_s6 + $0x18] sm:$0xff] }
 0x24d   : > { %v5619_v6 = vadd.f32 %v5474_v13, %v7059_v5  ;;  %v3692_v11 = vpop.f32.mrb[29].mxu0  ;;  %v3851_v61 = vpack.c.bf16 %v3829_v8, %v3828_v3  ;;  %5569 = vmatpush3.bf16.msra.mxu1 %v5568_v35 }
 0x24e   : > { %v5620_v33 = vadd.f32 %v3692_v11, %v7061_v50  ;;  %v5475_v34 = vpop.f32.mrb[30].mxu0  ;;  %v3850_v51 = vpack.c.bf16 %v3827_v27, %v3826_v57  ;;  %5570 = vmatprep.subr.bf16.mxu1 %v6013_v42 }
 0x24f   : > { %v3796_v4 = vadd.f32 %v5619_v6, %v7078_v1  ;;  %v5621_v20 = vadd.f32 %v5475_v34, %v7063_v25  ;;  %v3695_v58 = vpop.f32.mrb[31].mxu0  ;;  %v5571_v6 = vpack.c.bf16 %v4531_v52, %v4530_v44  ;;  %v4533_v34 = vld [vmem:[%s7319_s6 + $0x28] sm:$0xff] }
 0x250   : > { %v3794_v45 = vadd.f32 %v5620_v33, %v7078_v1  ;;  %v5622_v17 = vadd.f32 %v3695_v58, %v7065_v37  ;;  %5520 = vmatprep.mubr.bf16.mxu1 %v3850_v51  ;;  %v4532_v33 = vld [vmem:[%s7319_s6 + $0x20] sm:$0xff] }
 0x251   : > { %v3797_v40 = vadd.f32 %v5621_v20, %v7078_v1  ;;  %5521 = vmatmul.mubr.bf16.gmra.mrb[60].mxu1 %v3851_v61  ;;  %v3832_v28 = vmax.f32 %v3796_v4, 0.0 }
 0x252   : > { %v3795_v5 = vadd.f32 %v5622_v17, %v7078_v1  ;;  %v3830_v50 = vmax.f32 %v3794_v45, 0.0  ;;  %5572 = vmatpush3.bf16.msra.mxu1 %v5571_v6 }
 0x253   : > { %v3833_v46 = vmax.f32 %v3797_v40, 0.0  ;;  %5573 = vmatprep.subr.bf16.mxu1 %v6013_v42 }
 0x254   : > { %v3831_v48 = vmax.f32 %v3795_v5, 0.0  ;;  %v5478_v32 = vpop.f32.mrb[32].mxu0 }
 0x255   : > { %v5623_v49 = vadd.f32 %v5478_v32, %v7067_v55  ;;  %v3708_v30 = vpop.f32.mrb[33].mxu0  ;;  %v3853_v25 = vpack.c.bf16 %v3833_v46, %v3832_v28  ;;  %v5574_v28 = vpack.c.bf16 %v4533_v34, %v4532_v33  ;;  %v4534_v46 = vld [vmem:[%s7319_s6 + $0x30] sm:$0xff] }
 0x256   : > { %v5624_v36 = vadd.f32 %v3708_v30, %v7069_v41  ;;  %v5479_v14 = vpop.f32.mrb[34].mxu0  ;;  %v3852_v10 = vpack.c.bf16 %v3831_v48, %v3830_v50  ;;  %v4535_v50 = vld [vmem:[%s7319_s6 + $0x38] sm:$0xff] }
 0x257   : > { %v3800_v37 = vadd.f32 %v5623_v49, %v7078_v1  ;;  %v5625_v19 = vadd.f32 %v5479_v14, %v7071_v59  ;;  %v3711_v22 = vpop.f32.mrb[35].mxu0  ;;  %v4251_v59 = vpop.permute.xlu0 %4250  ;;  %5575 = vmatpush3.bf16.msra.mxu1 %v5574_v28 }
 0x258   : > { %v3798_v29 = vadd.f32 %v5624_v36, %v7078_v1  ;;  %v5626_v7 = vadd.f32 %v3711_v22, %v7073_v53  ;;  %5524 = vmatprep.mubr.bf16.mxu1 %v3852_v10  ;;  %5576 = vmatprep.subr.bf16.mxu1 %v6013_v42 }
 0x259   : > { %v3801_v24 = vadd.f32 %v5625_v19, %v7078_v1  ;;  %5525 = vmatmul.mubr.bf16.gmra.mrb[64].mxu1 %v3853_v25  ;;  %v3836_v26 = vmax.f32 %v3800_v37, 0.0 }
 0x25a   : > { %v3799_v55 = vadd.f32 %v5626_v7, %v7078_v1  ;;  %v3834_v41 = vmax.f32 %v3798_v29, 0.0  ;;  %v7162_v1 = vpop.permute.xlu1 %4285  ;;  %v5577_v29 = vpack.c.bf16 %v4535_v50, %v4534_v46 }
 0x25b   : > { %v3837_v0 = vmax.f32 %v3801_v24, 0.0  ;;  %v4256_v9 = vpop.permute.xlu0 %4255 }
 0x25c   : > { %v3835_v54 = vmax.f32 %v3799_v55, 0.0  ;;  %5578 = vmatpush3.bf16.msra.mxu1 %v5577_v29 }
 0x25d   : > { %v3855_v31 = vpack.c.bf16 %v3837_v0, %v3836_v26  ;;  %v4536_v0 = vld [vmem:[%s7319_s6 + $0x40] sm:$0xff]  ;;  %5579 = vmatprep.subr.bf16.mxu1 %v6013_v42 }
 0x25e   : > { %v3854_v56 = vpack.c.bf16 %v3835_v54, %v3834_v41  ;;  %v7171_v21 = vpop.permute.xlu1 %4295  ;;  %v4537_v41 = vld [vmem:[%s7319_s6 + $0x48] sm:$0xff] }
 0x25f   : > { %v7156_v53 = vpop.permute.xlu0 %4270  ;;  %v5580_v47 = vpack.c.bf16 %v4537_v41, %v4536_v0 }
 0x260   : > { %5528 = vmatprep.mubr.bf16.mxu1 %v3854_v56 }
 0x261   : > { %5529 = vmatmul.mubr.bf16.gmra.mrb[68].mxu1 %v3855_v31 }
 0x262   : > { %v7199_v58 = vpop.permute.xlu1 %4305  ;;  %5581 = vmatpush3.bf16.msra.mxu1 %v5580_v47 }
 0x263   : > { %v7160_v15 = vpop.permute.xlu0 %4280  ;;  %5582 = vmatprep.subr.bf16.mxu1 %v6013_v42 }
 0x266   : > { %v7220_v54 = vpop.permute.xlu1 %4315 }
 0x267   : > { %v7169_v16 = vpop.permute.xlu0 %4290 }
 0x26b   : > { %v7190_v11 = vpop.permute.xlu0 %4300 }
 0x26f   : > { %v7210_v14 = vpop.permute.xlu0 %4310 }
 0x273   : > { %v7225_v52 = vpop.permute.xlu0 %4320 }
 0x2f4   : > { %v5498_v62 = vpop.f32.mrb[36].mxu1 }
 0x2f5   : > { %v3970_v18 = vadd.f32 %v5498_v62, %v7167_v12  ;;  %v3961_v63 = vpop.f32.mrb[37].mxu1 }
 0x2f6   : > { %v3962_v60 = vadd.f32 %v7167_v12, %v3961_v63  ;;  %v5499_v23 = vpop.f32.mrb[38].mxu1 }
 0x2f7   : > { %v4106_v3 = vmax.f32 %v3970_v18, 1e-06  ;;  %v3973_v8 = vadd.f32 %v5499_v23, %v7167_v12  ;;  %v3964_v57 = vpop.f32.mrb[39].mxu1 }
 0x2f8   : > { %v4104_v27 = vmax.f32 %v3962_v60, 1e-06  ;;  %v3965_v13 = vadd.f32 %v7167_v12, %v3964_v57 }
 0x2f9   : > { %v4107_v61 = vmax.f32 %v3973_v8, 1e-06  ;;  %v4142_v51 = vmul.f32 %v4106_v3, %v4106_v3 }
 0x2fa   : > { %v4140_v4 = vmul.f32 %v4104_v27, %v4104_v27  ;;  %v4105_v20 = vmax.f32 %v3965_v13, 1e-06 }
 0x2fb   : > { %v4143_v45 = vmul.f32 %v4107_v61, %v4107_v61  ;;  %v4178_v49 = vmul.f32 %v4142_v51, %v4106_v3 }
 0x2fc   : > { %v4176_v17 = vmul.f32 %v4140_v4, %v4104_v27  ;;  %v4141_v40 = vmul.f32 %v4105_v20, %v4105_v20  ;;  %v5502_v5 = vpop.f32.mrb[40].mxu1 }
 0x2fd   : > { %v3986_v48 = vadd.f32 %v5502_v5, %v7167_v12  ;;  %v3977_v32 = vpop.f32.mrb[41].mxu1  ;;  %v4179_v10 = vmul.f32 %v4143_v45, %v4107_v61  ;;  %v7231_v61 = vpop.permute.xlu1 %4325 }
 0x2fe   : > { %v4177_v30 = vmul.f32 %v4141_v40, %v4105_v20  ;;  %v3978_v25 = vadd.f32 %v7167_v12, %v3977_v32  ;;  %v5503_v36 = vpop.f32.mrb[42].mxu1  ;;  %v4428_v7 = vmul.f32 %v4251_v59, %v4176_v17  ;;  %v4430_v59 = vmul.f32 %v7152_v2, %v4178_v49  ;;  %v7238_v32 = vpop.permute.xlu0 %4330 }
 0x2ff   : > { %v4110_v37 = vmax.f32 %v3986_v48, 1e-06  ;;  %v3989_v19 = vadd.f32 %v5503_v36, %v7167_v12  ;;  %v3980_v22 = vpop.f32.mrb[43].mxu1  ;;  %v4431_v43 = vmul.f32 %v7154_v39, %v4179_v10 }
 0x300   : > { %v4429_v24 = vmul.f32 %v4256_v9, %v4177_v30  ;;  %v4108_v55 = vmax.f32 %v3978_v25, 1e-06  ;;  %v3981_v26 = vadd.f32 %v7167_v12, %v3980_v22 }
 0x301   : > { %v4146_v31 = vmul.f32 %v4110_v37, %v4110_v37  ;;  %v4111_v56 = vmax.f32 %v3989_v19, 1e-06 }
 0x302   : > { %v4464_v9 = vadd.f32 %v4429_v24, %v4428_v7  ;;  %v4144_v62 = vmul.f32 %v4108_v55, %v4108_v55  ;;  %v4109_v18 = vmax.f32 %v3981_v26, 1e-06 }
 0x303   : > { %v4147_v63 = vmul.f32 %v4111_v56, %v4111_v56  ;;  %v4182_v3 = vmul.f32 %v4146_v31, %v4110_v37  ;;  %v7241_v37 = vpop.permute.xlu1 %4335 }
 0x304   : > { %v4465_v44 = vadd.f32 %v4464_v9, %v4430_v59  ;;  %v4180_v60 = vmul.f32 %v4144_v62, %v4108_v55  ;;  %v4145_v23 = vmul.f32 %v4109_v18, %v4109_v18  ;;  %v5506_v35 = vpop.f32.mrb[44].mxu1 }
 0x305   : > { %v4002_v8 = vadd.f32 %v5506_v35, %v7167_v12  ;;  %v3993_v57 = vpop.f32.mrb[45].mxu1  ;;  %v4183_v33 = vmul.f32 %v4147_v63, %v4111_v56  ;;  %v4434_v28 = vmul.f32 %v7160_v15, %v4182_v3 }
 0x306   : > { %v4432_v2 = vmul.f32 %v7156_v53, %v4180_v60  ;;  %v4466_v27 = vadd.f32 %v4465_v44, %v4431_v43  ;;  %v4181_v13 = vmul.f32 %v4145_v23, %v4109_v18  ;;  %v3994_v6 = vadd.f32 %v7167_v12, %v3993_v57  ;;  %v5507_v39 = vpop.f32.mrb[46].mxu1  ;;  %v7249_v18 = vpop.permute.xlu0 %4340 }
 0x307   : > { %v4114_v34 = vmax.f32 %v4002_v8, 1e-06  ;;  %v4005_v51 = vadd.f32 %v5507_v39, %v7167_v12  ;;  %v3996_v4 = vpop.f32.mrb[47].mxu1  ;;  %v4435_v30 = vmul.f32 %v7162_v1, %v4183_v33  ;;  %v7252_v23 = vpop.permute.xlu1 %4345 }
 0x308   : > { %v4467_v20 = vadd.f32 %v4466_v27, %v4432_v2  ;;  %v4433_v45 = vmul.f32 %v7158_v38, %v4181_v13  ;;  %v4112_v17 = vmax.f32 %v3994_v6, 1e-06  ;;  %v3997_v40 = vadd.f32 %v7167_v12, %v3996_v4 }
 0x309   : > { %v4150_v53 = vmul.f32 %v4114_v34, %v4114_v34  ;;  %v4115_v5 = vmax.f32 %v4005_v51, 1e-06 }
 0x30a   : > { %v4468_v46 = vadd.f32 %v4467_v20, %v4433_v45  ;;  %v4148_v50 = vmul.f32 %v4112_v17, %v4112_v17  ;;  %v4113_v48 = vmax.f32 %v3997_v40, 1e-06  ;;  %v4351_v4 = vpop.permute.xlu0 %4350 }
 0x30b   : > { %v4151_v49 = vmul.f32 %v4115_v5, %v4115_v5  ;;  %v4186_v19 = vmul.f32 %v4150_v53, %v4114_v34 }
 0x30c   : > { %v4469_v25 = vadd.f32 %v4468_v46, %v4434_v28  ;;  %v4184_v38 = vmul.f32 %v4148_v50, %v4112_v17  ;;  %v4149_v36 = vmul.f32 %v4113_v48, %v4113_v48  ;;  %v5510_v10 = vpop.f32.mrb[48].mxu1  ;;  %v4356_v46 = vpop.permute.xlu1 %4355 }
 0x30d   : > { %v4018_v22 = vadd.f32 %v5510_v10, %v7167_v12  ;;  %v4009_v29 = vpop.f32.mrb[49].mxu1  ;;  %v4187_v0 = vmul.f32 %v4151_v49, %v4115_v5  ;;  %v4438_v47 = vmul.f32 %v7190_v11, %v4186_v19 }
 0x30e   : > { %v4436_v15 = vmul.f32 %v7169_v16, %v4184_v38  ;;  %v4470_v7 = vadd.f32 %v4469_v25, %v4435_v30  ;;  %v4185_v24 = vmul.f32 %v4149_v36, %v4113_v48  ;;  %v4010_v55 = vadd.f32 %v7167_v12, %v4009_v29  ;;  %v5511_v26 = vpop.f32.mrb[50].mxu1 }
 0x30f   : > { %v4118_v41 = vmax.f32 %v4018_v22, 1e-06  ;;  %v4021_v1 = vadd.f32 %v5511_v26, %v7167_v12  ;;  %v4012_v31 = vpop.f32.mrb[51].mxu1  ;;  %v4439_v3 = vmul.f32 %v7199_v58, %v4187_v0 }
 0x310   : > { %v4471_v56 = vadd.f32 %v4470_v7, %v4436_v15  ;;  %v4437_v59 = vmul.f32 %v7171_v21, %v4185_v24  ;;  %v4116_v9 = vmax.f32 %v4010_v55, 1e-06  ;;  %v4013_v62 = vadd.f32 %v7167_v12, %v4012_v31  ;;  %v4361_v15 = vpop.permute.xlu0 %4360 }
 0x311   : > { %v4154_v63 = vmul.f32 %v4118_v41, %v4118_v41  ;;  %v4119_v16 = vmax.f32 %v4021_v1, 1e-06  ;;  %v4366_v1 = vpop.permute.xlu1 %4365 }
 0x312   : > { %v4472_v43 = vadd.f32 %v4471_v56, %v4437_v59  ;;  %v4152_v44 = vmul.f32 %v4116_v9, %v4116_v9  ;;  %v4117_v60 = vmax.f32 %v4013_v62, 1e-06 }
 0x313   : > { %v4155_v35 = vmul.f32 %v4119_v16, %v4119_v16  ;;  %v4190_v27 = vmul.f32 %v4154_v63, %v4118_v41 }
 0x314   : > { %v4473_v8 = vadd.f32 %v4472_v43, %v4438_v47  ;;  %v4188_v57 = vmul.f32 %v4152_v44, %v4116_v9  ;;  %v4153_v21 = vmul.f32 %v4117_v60, %v4117_v60  ;;  %v5514_v2 = vpop.f32.mrb[52].mxu1 }
 0x315   : > { %v4034_v13 = vadd.f32 %v5514_v2, %v7167_v12  ;;  %v4025_v6 = vpop.f32.mrb[53].mxu1  ;;  %v4191_v20 = vmul.f32 %v4155_v35, %v4119_v16  ;;  %v4442_v48 = vmul.f32 %v7225_v52, %v4190_v27 }
 0x316   : > { %v4440_v39 = vmul.f32 %v7210_v14, %v4188_v57  ;;  %v4474_v33 = vadd.f32 %v4473_v8, %v4439_v3  ;;  %v4189_v11 = vmul.f32 %v4153_v21, %v4117_v60  ;;  %v4026_v34 = vadd.f32 %v7167_v12, %v4025_v6  ;;  %v5515_v51 = vpop.f32.mrb[54].mxu1  ;;  %v4371_v3 = vpop.permute.xlu0 %4370 }
 0x317   : > { %v4122_v45 = vmax.f32 %v4034_v13, 1e-06  ;;  %v4037_v58 = vadd.f32 %v5515_v51, %v7167_v12  ;;  %v4028_v17 = vpop.f32.mrb[55].mxu1  ;;  %v4443_v36 = vmul.f32 %v7231_v61, %v4191_v20  ;;  %v4376_v6 = vpop.permute.xlu1 %4375 }
 0x318   : > { %v4475_v40 = vadd.f32 %v4474_v33, %v4440_v39  ;;  %v4441_v53 = vmul.f32 %v7220_v54, %v4189_v11  ;;  %v4120_v5 = vmax.f32 %v4026_v34, 1e-06  ;;  %v4029_v28 = vadd.f32 %v7167_v12, %v4028_v17 }
 0x319   : > { %v4158_v50 = vmul.f32 %v4122_v45, %v4122_v45  ;;  %v4123_v14 = vmax.f32 %v4037_v58, 1e-06 }
 0x31a   : > { %v4476_v49 = vadd.f32 %v4475_v40, %v4441_v53  ;;  %v4156_v30 = vmul.f32 %v4120_v5, %v4120_v5  ;;  %v4121_v25 = vmax.f32 %v4029_v28, 1e-06 }
 0x31b   : > { %v4159_v38 = vmul.f32 %v4123_v14, %v4123_v14  ;;  %v4194_v54 = vmul.f32 %v4158_v50, %v4122_v45  ;;  %v4381_v50 = vpop.permute.xlu0 %4380 }
 0x31c   : > { %v4477_v10 = vadd.f32 %v4476_v49, %v4442_v48  ;;  %v4192_v19 = vmul.f32 %v4156_v30, %v4120_v5  ;;  %v4157_v22 = vmul.f32 %v4121_v25, %v4121_v25  ;;  %v5518_v29 = vpop.f32.mrb[56].mxu1 }
 0x31d   : > { %v4050_v7 = vadd.f32 %v5518_v29, %v7167_v12  ;;  %v4041_v24 = vpop.f32.mrb[57].mxu1  ;;  %v4195_v31 = vmul.f32 %v4159_v38, %v4123_v14  ;;  %v4386_v38 = vpop.permute.xlu1 %4385 }
 0x31e   : > { %v4444_v55 = vmul.f32 %v7238_v32, %v4192_v19  ;;  %v4478_v26 = vadd.f32 %v4477_v10, %v4443_v36  ;;  %v4193_v0 = vmul.f32 %v4157_v22, %v4121_v25  ;;  %v4042_v52 = vadd.f32 %v7167_v12, %v4041_v24  ;;  %v5519_v41 = vpop.f32.mrb[58].mxu1 }
 0x31f   : > { %v4126_v56 = vmax.f32 %v4050_v7, 1e-06  ;;  %v4053_v61 = vadd.f32 %v5519_v41, %v7167_v12  ;;  %v4044_v59 = vpop.f32.mrb[59].mxu1  ;;  %v4446_v32 = vmul.f32 %v7249_v18, %v4194_v54  ;;  %v4447_v57 = vmul.f32 %v7252_v23, %v4195_v31  ;;  %v4391_v41 = vpop.permute.xlu0 %4390 }
 0x320   : > { %v4479_v9 = vadd.f32 %v4478_v26, %v4444_v55  ;;  %v4445_v62 = vmul.f32 %v7241_v37, %v4193_v0  ;;  %v4124_v63 = vmax.f32 %v4042_v52, 1e-06  ;;  %v4045_v16 = vadd.f32 %v7167_v12, %v4044_v59 }
 0x321   : > { %v4162_v47 = vmul.f32 %v4126_v56, %v4126_v56  ;;  %v4127_v43 = vmax.f32 %v4053_v61, 1e-06 }
 0x322   : > { %v4480_v44 = vadd.f32 %v4479_v9, %v4445_v62  ;;  %v4160_v60 = vmul.f32 %v4124_v63, %v4124_v63  ;;  %v4125_v35 = vmax.f32 %v4045_v16, 1e-06  ;;  %v4396_v16 = vpop.permute.xlu1 %4395 }
 0x323   : > { %v4163_v8 = vmul.f32 %v4127_v43, %v4127_v43  ;;  %v4198_v37 = vmul.f32 %v4162_v47, %v4126_v56 }
 0x324   : > { %v4481_v21 = vadd.f32 %v4480_v44, %v4446_v32  ;;  %v4196_v2 = vmul.f32 %v4160_v60, %v4124_v63  ;;  %v4161_v27 = vmul.f32 %v4125_v35, %v4125_v35  ;;  %v5522_v13 = vpop.f32.mrb[60].mxu1 }
 0x325   : > { %v4066_v39 = vadd.f32 %v5522_v13, %v7167_v12  ;;  %v4057_v33 = vpop.f32.mrb[61].mxu1  ;;  %v4199_v45 = vmul.f32 %v4163_v8, %v4127_v43  ;;  %v4450_v49 = vmul.f32 %v4361_v15, %v4198_v37  ;;  %v4401_v13 = vpop.permute.xlu0 %4400 }
 0x326   : > { %v4448_v11 = vmul.f32 %v4351_v4, %v4196_v2  ;;  %v4482_v34 = vadd.f32 %v4481_v21, %v4447_v57  ;;  %v4197_v51 = vmul.f32 %v4161_v27, %v4125_v35  ;;  %v4058_v18 = vadd.f32 %v7167_v12, %v4057_v33  ;;  %v5523_v20 = vpop.f32.mrb[62].mxu1 }
 0x327   : > { %v4130_v58 = vmax.f32 %v4066_v39, 1e-06  ;;  %v4069_v17 = vadd.f32 %v5523_v20, %v7167_v12  ;;  %v4060_v23 = vpop.f32.mrb[63].mxu1  ;;  %v4451_v10 = vmul.f32 %v4366_v1, %v4199_v45  ;;  %v4406_v20 = vpop.permute.xlu1 %4405 }
 0x328   : > { %v4483_v40 = vadd.f32 %v4482_v34, %v4448_v11  ;;  %v4449_v53 = vmul.f32 %v4356_v46, %v4197_v51  ;;  %v4128_v5 = vmax.f32 %v4058_v18, 1e-06  ;;  %v4061_v28 = vadd.f32 %v7167_v12, %v4060_v23 }
 0x329   : > { %v4166_v14 = vmul.f32 %v4130_v58, %v4130_v58  ;;  %v4131_v48 = vmax.f32 %v4069_v17, 1e-06 }
 0x32a   : > { %v4484_v4 = vadd.f32 %v4483_v40, %v4449_v53  ;;  %v4164_v30 = vmul.f32 %v4128_v5, %v4128_v5  ;;  %v4129_v25 = vmax.f32 %v4061_v28, 1e-06 }
 0x32b   : > { %v4167_v36 = vmul.f32 %v4131_v48, %v4131_v48  ;;  %v4202_v7 = vmul.f32 %v4166_v14, %v4130_v58 }
 0x32c   : > { %v4485_v19 = vadd.f32 %v4484_v4, %v4450_v49  ;;  %v4200_v22 = vmul.f32 %v4164_v30, %v4128_v5  ;;  %v4165_v29 = vmul.f32 %v4129_v25, %v4129_v25  ;;  %v5526_v54 = vpop.f32.mrb[64].mxu1 }
 0x32d   : > { %v4082_v46 = vadd.f32 %v5526_v54, %v7167_v12  ;;  %v4073_v24 = vpop.f32.mrb[65].mxu1  ;;  %v4203_v31 = vmul.f32 %v4167_v36, %v4131_v48  ;;  %v4454_v32 = vmul.f32 %v4381_v50, %v4202_v7 }
 0x32e   : > { %v4452_v55 = vmul.f32 %v4371_v3, %v4200_v22  ;;  %v4486_v26 = vadd.f32 %v4485_v19, %v4451_v10  ;;  %v4201_v0 = vmul.f32 %v4165_v29, %v4129_v25  ;;  %v4074_v52 = vadd.f32 %v7167_v12, %v4073_v24  ;;  %v5527_v15 = vpop.f32.mrb[66].mxu1  ;;  %v4411_v25 = vpop.permute.xlu0 %4410 }
 0x32f   : > { %v4134_v56 = vmax.f32 %v4082_v46, 1e-06  ;;  %v4085_v61 = vadd.f32 %v5527_v15, %v7167_v12  ;;  %v4076_v1 = vpop.f32.mrb[67].mxu1  ;;  %v4455_v8 = vmul.f32 %v4386_v38, %v4203_v31  ;;  %v4416_v29 = vpop.permute.xlu1 %4415 }
 0x330   : > { %v4487_v59 = vadd.f32 %v4486_v26, %v4452_v55  ;;  %v4453_v9 = vmul.f32 %v4376_v6, %v4201_v0  ;;  %v4132_v62 = vmax.f32 %v4074_v52, 1e-06  ;;  %v4077_v63 = vadd.f32 %v7167_v12, %v4076_v1 }
 0x331   : > { %v4170_v47 = vmul.f32 %v4134_v56, %v4134_v56  ;;  %v4135_v43 = vmax.f32 %v4085_v61, 1e-06 }
 0x332   : > { %v4488_v44 = vadd.f32 %v4487_v59, %v4453_v9  ;;  %v4168_v60 = vmul.f32 %v4132_v62, %v4132_v62  ;;  %v4133_v35 = vmax.f32 %v4077_v63, 1e-06  ;;  %v4421_v0 = vpop.permute.xlu0 %4420 }
 0x333   : > { %v4171_v3 = vmul.f32 %v4135_v43, %v4135_v43  ;;  %v4206_v37 = vmul.f32 %v4170_v47, %v4134_v56 }
 0x334   : > { %v4489_v57 = vadd.f32 %v4488_v44, %v4454_v32  ;;  %v4204_v21 = vmul.f32 %v4168_v60, %v4132_v62  ;;  %v4169_v2 = vmul.f32 %v4133_v35, %v4133_v35  ;;  %v5530_v27 = vpop.f32.mrb[68].mxu1 }
 0x335   : > { %v4098_v6 = vadd.f32 %v5530_v27, %v7167_v12  ;;  %v4089_v39 = vpop.f32.mrb[69].mxu1  ;;  %v4207_v45 = vmul.f32 %v4171_v3, %v4135_v43  ;;  %v4458_v50 = vmul.f32 %v4401_v13, %v4206_v37  ;;  %v4539_v27 = vld [vmem:[%s7319_s6 + $0x58] sm:$0xff]  ;;  %v4540_v37 = vld [vmem:[%s7319_s6 + $0x60] sm:$0xff] }
 0x336   : > { %v4456_v33 = vmul.f32 %v4391_v41, %v4204_v21  ;;  %v4490_v11 = vadd.f32 %v4489_v57, %v4455_v8  ;;  %v4205_v34 = vmul.f32 %v4169_v2, %v4133_v35  ;;  %v4090_v51 = vadd.f32 %v7167_v12, %v4089_v39  ;;  %v5531_v18 = vpop.f32.mrb[70].mxu1  ;;  %v4426_v41 = vpop.permute.xlu1 %4425  ;;  %v4538_v2 = vld [vmem:[%s7319_s6 + $0x50] sm:$0xff] }
 0x337   : > { %v4138_v58 = vmax.f32 %v4098_v6, 1e-06  ;;  %v4101_v17 = vadd.f32 %v5531_v18, %v7167_v12  ;;  %v4092_v23 = vpop.f32.mrb[71].mxu1  ;;  %v4459_v38 = vmul.f32 %v4406_v20, %v4207_v45  ;;  %v4511_v35 = vlaneseq  ;;  %v4541_v6 = vld [vmem:[%s7319_s6 + $0x68] sm:$0xff] }
 0x338   : > { %v4491_v40 = vadd.f32 %v4490_v11, %v4456_v33  ;;  %v4457_v53 = vmul.f32 %v4396_v16, %v4205_v34  ;;  %v4136_v5 = vmax.f32 %v4090_v51, 1e-06  ;;  %v4093_v28 = vadd.f32 %v7167_v12, %v4092_v23  ;;  %v4542_v11 = vld [vmem:[%s7319_s6 + $0x70] sm:$0xff]  ;;  %v4543_v34 = vld [vmem:[%s7319_s6 + $0x78] sm:$0xff] }
 0x339   : > { %v4139_v14 = vmax.f32 %v4101_v17, 1e-06  ;;  %v4174_v49 = vmul.f32 %v4138_v58, %v4138_v58  ;;  %v4512_v3 = vand.u32 127, %v4511_v35  ;;  %v5583_v13 = vpack.c.bf16 %v4539_v27, %v4538_v2 }
 0x33a   : > { %v4492_v48 = vadd.f32 %v4491_v40, %v4457_v53  ;;  %v4172_v4 = vmul.f32 %v4136_v5, %v4136_v5  ;;  %v4137_v30 = vmax.f32 %v4093_v28, 1e-06  ;;  %v6015_v39 = vmov 0.0   ;;  %v4544_v28 = vld [vmem:[%s7320_s7] sm:$0x1] }
 0x33b   : > { %v4175_v19 = vmul.f32 %v4139_v14, %v4139_v14  ;;  %v4210_v54 = vmul.f32 %v4174_v49, %v4138_v58  ;;  %vm4513_vm8 = vcmp.lt.s32.totalorder %v4512_v3, 32  ;;  %5564 = vmatprep.mubr.msk.f32.mxu1 %vm6014_vm9, %v6015_v39  ;;  %5584 = vmatpush3.bf16.msra.mxu1 %v5583_v13  ;;  %v5586_v33 = vpack.c.bf16 %v4541_v6, %v4540_v37 }
 0x33c   : > { %v4493_v36 = vadd.f32 %v4492_v48, %v4458_v50  ;;  %v4208_v10 = vmul.f32 %v4172_v4, %v4136_v5  ;;  %v4173_v22 = vmul.f32 %v4137_v30, %v4137_v30  ;;  %5585 = vmatprep.subr.bf16.mxu1 %v6013_v42  ;;  %v5589_v51 = vpack.c.bf16 %v4543_v34, %v4542_v11 }
 0x33d   : > { %v4211_v26 = vmul.f32 %v4175_v19, %v4139_v14  ;;  %v4462_v52 = vmul.f32 %v4421_v0, %v4210_v54 }
 0x33e   : > { %v4460_v7 = vmul.f32 %v4411_v25, %v4208_v10  ;;  %v4494_v46 = vadd.f32 %v4493_v36, %v4459_v38  ;;  %v4209_v24 = vmul.f32 %v4173_v22, %v4137_v30 }
 0x33f   : > { %v4463_v31 = vmul.f32 %v4426_v41, %v4211_v26  ;;  %5587 = vmatpush3.bf16.msra.mxu1 %v5586_v33 }
 0x340   : > { %v4495_v55 = vadd.f32 %v4494_v46, %v4460_v7  ;;  %v4461_v12 = vmul.f32 %v4416_v29, %v4209_v24  ;;  %5588 = vmatprep.subr.bf16.mxu1 %v6013_v42 }
 0x342   : > { %v4496_v15 = vadd.f32 %v4495_v55, %v4461_v12 }
 0x343   : > { %5590 = vmatpush3.bf16.msra.mxu1 %v5589_v51 }
 0x344   : > { %v4497_v56 = vadd.f32 %v4496_v15, %v4462_v52 }
 0x346   : > { %v4498_v61 = vadd.f32 %v4497_v56, %v4463_v31 }
 0x348   : > { %v4499_v1 = vrot.slane %v4498_v61, 4 }
 0x34a   : > { %v4500_v59 = vadd.f32 %v4499_v1, %v4498_v61 }
 0x34c   : > { %v4501_v9 = vrot.slane %v4500_v59, 2 }
 0x34e   : > { %v4502_v62 = vadd.f32 %v4501_v9, %v4500_v59 }
 0x350   : > { %v4503_v63 = vrot.slane %v4502_v62, 1 }
 0x352   : > { %v4504_v16 = vadd.f32 %v4503_v63, %v4502_v62 }
 0x354   : > { %v4505_v47 = vmul.f32 0.00390625, %v4504_v16 }
 0x356   : > { %5977 = vlog2.f32 %v4505_v47 }
 0x360   : > { %v5978_v43 = vpop.eup %5977 }
 0x361   : > { %v4507_v32 = vmul.f32 0.6931472, %v5978_v43 }
 0x363   : > { %v4508_v44 = vmul.f32 0.33333334, %v4507_v32 }
 0x365   : > { %v4509_v60 = vmul.f32 1.442695, %v4508_v44 }
 0x367   : > { %5979 = vpow2.f32 %v4509_v60 }
 0x371   : > { %v5980_v8 = vpop.eup %5979 }
 0x372   : > { %v4514_v57 = vsel %vm4513_vm8, %v5980_v8, 0.0 }
 0x373   : > { %v4515_v21 = vmul.f32 %v4514_v57, %v4514_v57 }
 0x375   : > { %4516 = vadd.xlane.f32.xlu0 %v4515_v21 }
 0x402   : > { %v4517_v18 = vpop.xlane.xlu0 %4516 }
 0x403   : > { %5981 = vrsqrt.f32 %v4517_v18  ;;  %vm4520_vm10 = vcmp.eq.f32.partialorder %v4517_v18, inf  ;;  %v4523_v58 = vand.u32 2147483648, %v4517_v18  ;;  %vm4522_vm11 = vcmp.eq.f32.partialorder %v4517_v18, 0.0 }
 0x40d   : > { %v5982_v20 = vpop.eup %5981 }
 0x40e   : > { %v4519_v45 = vmul.f32 %v5982_v20, %v4517_v18 }
 0x410   : > { %v4521_v17 = vsel %vm4520_vm10, %v4517_v18, %v4519_v45 }
 0x411   : > { %v4524_v23 = vsel %vm4522_vm11, %v4523_v58, %v4521_v17 }
 0x412   : > { %v4525_v40 = vadd.f32 1e-06, %v4524_v23 }
 0x414   : > { %5983 = vrcp.f32 %v4525_v40 }
 0x41e   : > { %v5984_v53 = vpop.eup %5983 }
 0x41f   : > { %v4527_v5 = vmul.f32 %v5984_v53, %v4514_v57 }
 0x421   : > { %5565 = vmatmul.mubr.f32.vlgmr.msra.gmra.mrb[72].mxu1 %v4527_v5 }
 0x4f4   : > { %v4611_v42 = vpop.f32.mrb[72].mxu1 }
 0x4f5   : > { %v4612_v50 = vadd.f32 %v4611_v42, %v4544_v28  ;;  %v5566_v14 = vpop.f32.mrb[73].mxu1 }
 0x4f7   : > { %v4615_v48 = vmul.f32 %v4612_v50, %v4612_v50 }
 0x4f9   : > { %v4617_v49 = vsel %vm4616_vm12, %v4615_v48, 0.0 }
 0x4fa   : > { %4618 = vadd.xlane.f32.xlu1 %v4617_v49 }
 0x587   : > { %v4619_v4 = vpop.xlane.xlu1 %4618 }
 0x588   : > { %5985 = vrsqrt.f32 %v4619_v4  ;;  %vm4622_vm13 = vcmp.eq.f32.partialorder %v4619_v4, inf  ;;  %v4625_v38 = vand.u32 2147483648, %v4619_v4  ;;  %vm4624_vm14 = vcmp.eq.f32.partialorder %v4619_v4, 0.0 }
 0x592   : > { %v5986_v30 = vpop.eup %5985 }
 0x593   : > { %v4621_v25 = vmul.f32 %v5986_v30, %v4619_v4 }
 0x595   : > { %v4623_v36 = vsel %vm4622_vm13, %v4619_v4, %v4621_v25 }
 0x596   : > { %v4626_v10 = vsel %vm4624_vm14, %v4625_v38, %v4623_v36 }
 0x597   : > { %v4627_v19 = vadd.f32 1e-06, %v4626_v10 }
 0x599   : > { %5987 = vrcp.f32 %v4627_v19 }
 0x5a3   : > { %v5988_v22 = vpop.eup %5987 }
 0x5a4   : > { %v4629_v29 = vmul.f32 %v5988_v22, %v4612_v50 }
 0x5a6   : > { %4630 = vst [vmem:[%s301_s17] sm:$0x1] %v4629_v29 }
 0x5a7 PF: > { %s18_s27 = sadd.s32 1, %s6010_s27  }
 0x5a8   : > { %p15_p4 = scmp.ge.s32.totalorder %s18_s27, 4  }
 0x5aa   :  { %17 = sbr.rel (!%p15_p4) target bundleno = 1 (0x1), region = 82 }

</bundles_post_ra>
